<compile_context>
chip_gen: v7x
topology: tpu7x:2x2x1
jax: 0.10.0
libtpu: 0.0.40
codegen_flags: <defaults>
</compile_context>

<pallas_src>
import functools

import jax
import jax.numpy as jnp
from jax.experimental import pallas as pl
from jax.experimental.pallas import tpu as pltpu

EPS = 1e-5  # nn.InstanceNorm2d default eps


def _cond_resblock_kernel(x_ref, g1_ref, b1_ref, g2_ref, b2_ref, mask_ref,
                          w1_ref, cb1_ref, w2_ref, cb2_ref, ws_ref, sb_ref,
                          o_ref, *, shifts):
    NB, _, HW = x_ref.shape            # batch chunk, in-channels (padded), H*W
    inv_hw = 1.0 / HW

    masks = mask_ref[...]              # (9, 1, HW) f32 {0,1}; grid-invariant input

    def inorm(h, g, b):
        # Per-sample, per-channel instance norm over the spatial (lane) axis.
        # Single traversal: both reductions issue together instead of
        # mean -> center -> second reduction (shorter serialized XLU chain).
        s1 = jnp.sum(h, axis=2, keepdims=True)
        s2 = jnp.sum(h * h, axis=2, keepdims=True)
        m = s1 * inv_hw
        v = jnp.maximum(s2 * inv_hw - m * m, 0.0)   # guard against cancellation
        return (h - m) * jax.lax.rsqrt(v + EPS) * g + b

    def elu(h):
        # PyTorch F.elu(alpha=1).  exp is EUP; expm1 kept out for lowering safety.
        return jnp.where(h > 0, h, jnp.exp(h) - 1.0)

    def conv3x3(h, w_ref_, cb_ref_):
        # h: (NB, C, HW) f32 -> (NB, Co, HW) f32.
        # im2col: 9 shifted taps concatenated along channels, then ONE
        # weight-stationary (Co, 9C) x (9C, HW) MXU matmul per sample with f32
        # accumulation inside the MXU (no per-tap VPU accumulator adds, no
        # per-tap weight broadcast over the batch).
        # TODO(synk): on v6e/v7x cast h to bf16 *before* the rolls (bf16 lane
        # rotate) to halve roll/concat traffic; kept f32 here so rolls/masking
        # stay on the guaranteed 32-bit path (and v5e has no bf16 VPU).
        w = w_ref_[...]                                   # (Co, 9C) bf16
        outs = []
        for n in range(NB):
            hn = h[n]                                     # (C, HW) f32
            cols = []
            for t, s in enumerate(shifts):
                src = hn if s == 0 else pltpu.roll(hn, shift=s, axis=1) * masks[t]
                cols.append(src.astype(jnp.bfloat16))
            im = jnp.concatenate(cols, axis=0)            # (9C, HW) bf16, tile-aligned
            outs.append(jnp.dot(w, im, preferred_element_type=jnp.float32))
        return jnp.stack(outs, axis=0) + cb_ref_[...]     # (NB, Co, HW) f32

    # ---- branch: norm1 -> ELU -> conv1 -> norm2 -> ELU -> conv2 ----
    h = conv3x3(elu(inorm(x_ref[...], g1_ref[...], b1_ref[...])), w1_ref, cb1_ref)
    h = conv3x3(elu(inorm(h, g2_ref[...], b2_ref[...])), w2_ref, cb2_ref)

    # ---- shortcut (1x1 conv) last: short live range for its f32 result;
    #      the x input block is still resident in VMEM, so re-reading is cheap.
    ws = ws_ref[...]                                      # (Co, Ci) bf16
    xb = x_ref[...].astype(jnp.bfloat16)
    sc = jnp.stack([jnp.dot(ws, xb[n], preferred_element_type=jnp.float32)
                    for n in range(NB)], axis=0) + sb_ref[...]

    # TODO(synk): optionally store bf16 output (halve write DMA) if downstream allows.
    o_ref[...] = (h + sc).astype(o_ref.dtype)


def _round_up(v, m):
    return (v + m - 1) // m * m


def _pick_batch_chunk(n, cap=4):
    """Largest divisor of n that is <= cap, preferring >= 2 grid steps so
    ("parallel",) can shard batch chunks across v7x's two TensorCores."""
    if n > 1:
        cap = min(cap, n // 2)
    c = max(1, min(n, cap))
    while n % c:
        c -= 1
    return c


def cond_resblock(x_nchw, gamma1, beta1, gamma2, beta2,
                  w1_oihw, cb1, w2_oihw, cb2, ws_oihw, sb,
                  *, batch_chunk=None, vmem_limit_bytes=None):
    """Fused CondResBlock forward.

    x_nchw : (N, Cin, H, W) f32 (PyTorch layout)
    gamma*/beta*: per-sample conditional-IN affine, (N, C) f32
    w*_oihw: PyTorch Conv2d weights, (Cout, Cin, 3, 3); shortcut (Cout, Cin, 1, 1)
    Returns (N, Cout, H, W) f32.

    batch_chunk (samples per grid step) at real NCSN shapes:
      v6e (128 MiB VMEM): up to 8;  v7x (64 MiB) / v5e (16 MiB scoped): 2-4.
    vmem_limit_bytes: raise above the scoped default (16/32 MiB) at real shapes.
    """
    f32, bf16 = jnp.float32, jnp.bfloat16
    N, Cin, H, W = x_nchw.shape
    Cout = w1_oihw.shape[0]
    HW = H * W

    # Pad channel counts to a multiple of the bf16 sublane tile so im2col
    # concat pieces / weight columns are tile-aligned.  No-op at real NCSN
    # channel counts; padded channels are zeros against zero weights.
    P = 16
    Cip, Cop = _round_up(Cin, P), _round_up(Cout, P)

    nb = batch_chunk or _pick_batch_chunk(N)
    assert N % nb == 0, "batch chunk must divide N"
    grid = (N // nb,)

    # activations as (N, C, HW): lane dim is H*W (lane-dense), no transposes
    x = jnp.pad(x_nchw.reshape(N, Cin, HW).astype(f32),
                ((0, 0), (0, Cip - Cin), (0, 0)))

    # conv weights -> (Cout_p, 9*Cin_p); column index = tap*Cin_p + cin with
    # tap = (dy+1)*3 + (dx+1), matching the kernel's im2col concat order.
    def to_im2col_w(w, cip, cop):
        co, ci = w.shape[0], w.shape[1]
        wp = jnp.pad(w, ((0, cop - co), (0, cip - ci), (0, 0), (0, 0)))
        return jnp.transpose(wp, (0, 2, 3, 1)).reshape(cop, 9 * cip).astype(bf16)

    w1_2d = to_im2col_w(w1_oihw, Cip, Cop)
    w2_2d = to_im2col_w(w2_oihw, Cop, Cop)
    ws_2d = jnp.pad(ws_oihw.reshape(Cout, Cin),
                    ((0, Cop - Cout), (0, Cip - Cin))).astype(bf16)

    colb = lambda v: jnp.pad(v, (0, Cop - v.shape[0])).reshape(1, Cop, 1).astype(f32)
    cb1c, cb2c, sbc = colb(cb1), colb(cb2), colb(sb)

    padc = lambda a, cp: jnp.pad(a, ((0, 0), (0, cp - a.shape[1]))).astype(f32)
    g1 = padc(gamma1, Cip).reshape(N, Cip, 1)
    b1 = padc(beta1, Cip).reshape(N, Cip, 1)
    g2 = padc(gamma2, Cop).reshape(N, Cop, 1)
    b2 = padc(beta2, Cop).reshape(N, Cop, 1)

    # 3x3 tap shifts (flattened spatial / lane axis) and border masks, computed
    # ONCE here and passed as a tiny grid-invariant input (constant index_map).
    pos = jnp.arange(HW, dtype=jnp.int32)
    yi, xi = pos // W, pos % W
    shifts, masks = [], []
    for dy in (-1, 0, 1):
        for dx in (-1, 0, 1):
            shifts.append(int((-(dy * W + dx)) % HW))
            masks.append((yi + dy >= 0) & (yi + dy < H) &
                         (xi + dx >= 0) & (xi + dx < W))
    mask = jnp.stack(masks).astype(f32).reshape(9, 1, HW)

    per_chunk = lambda c: pl.BlockSpec((nb, c, 1), lambda i: (i, 0, 0))
    const3 = lambda s: pl.BlockSpec(s, lambda i: (0, 0, 0))
    const2 = lambda s: pl.BlockSpec(s, lambda i: (0, 0))

    out = pl.pallas_call(
        functools.partial(_cond_resblock_kernel, shifts=tuple(shifts)),
        out_shape=jax.ShapeDtypeStruct((N, Cop, HW), x.dtype),
        grid_spec=pltpu.PrefetchScalarGridSpec(
            num_scalar_prefetch=0,
            grid=grid,
            in_specs=[
                pl.BlockSpec((nb, Cip, HW), lambda i: (i, 0, 0)),   # x
                per_chunk(Cip), per_chunk(Cip),                     # gamma1, beta1
                per_chunk(Cop), per_chunk(Cop),                     # gamma2, beta2
                const3((9, 1, HW)),                                 # border masks
                const2((Cop, 9 * Cip)), const3((1, Cop, 1)),        # conv1 W, b
                const2((Cop, 9 * Cop)), const3((1, Cop, 1)),        # conv2 W, b
                const2((Cop, Cip)), const3((1, Cop, 1)),            # shortcut W, b
            ],
            out_specs=pl.BlockSpec((nb, Cop, HW), lambda i: (i, 0, 0)),
        ),
        compiler_params=pltpu.CompilerParams(
            dimension_semantics=("parallel",),
            vmem_limit_bytes=vmem_limit_bytes),
    )(x, g1, b1, g2, b2, mask, w1_2d, cb1c, w2_2d, cb2c, ws_2d, sbc)

    # drop padded channels; back to NCHW
    return out[:, :Cout, :].reshape(N, Cout, H, W)


# ----------------- pure-JAX reference (same bf16-operand policy) -----------------
def _ref_forward(x_nchw, gamma1, beta1, gamma2, beta2,
                 w1_oihw, cb1, w2_oihw, cb2, ws_oihw, sb):
    f32, bf16 = jnp.float32, jnp.bfloat16

    def inorm(h, g, b):
        m = h.mean(axis=(2, 3), keepdims=True)
        v = ((h - m) ** 2).mean(axis=(2, 3), keepdims=True)
        return ((h - m) * jax.lax.rsqrt(v + EPS)
                * g[:, :, None, None] + b[:, :, None, None])

    def elu(h):
        return jnp.where(h > 0, h, jnp.exp(h) - 1.0)

    def conv(h, w, b):
        # mirrors kernel numerics: bf16 operands, f32 accumulation
        y = jax.lax.conv_general_dilated(
            h.astype(bf16), w.astype(bf16), (1, 1), 'SAME',
            dimension_numbers=('NCHW', 'OIHW', 'NCHW'),
            preferred_element_type=f32)
        return y + b[None, :, None, None]

    sc = conv(x_nchw, ws_oihw, sb)
    h = conv(elu(inorm(x_nchw, gamma1, beta1)), w1_oihw, cb1)
    h = conv(elu(inorm(h, gamma2, beta2)), w2_oihw, cb2)
    return h + sc


if __name__ == "__main__":
    N, Cin, Cout, H, W = 2, 4, 8, 16, 16
    num_levels = 10

    key = jax.random.PRNGKey(0)
    keys = jax.random.split(key, 10)

    x = jax.random.normal(keys[0], (N, Cin, H, W), jnp.float32)        # NCHW
    noise_labels = jax.random.randint(keys[1], (N,), 0, num_levels)

    # ConditionalInstanceNorm2d embeddings: gamma ~ N(1, 0.02), beta = 0
    g1_embed = 1.0 + 0.02 * jax.random.normal(keys[2], (num_levels, Cin), jnp.float32)
    b1_embed = jnp.zeros((num_levels, Cin), jnp.float32)
    g2_embed = 1.0 + 0.02 * jax.random.normal(keys[3], (num_levels, Cout), jnp.float32)
    b2_embed = jnp.zeros((num_levels, Cout), jnp.float32)

    # conv weights in PyTorch OIHW layout
    w1 = 0.1 * jax.random.normal(keys[4], (Cout, Cin, 3, 3), jnp.float32)
    cb1 = 0.1 * jax.random.normal(keys[5], (Cout,), jnp.float32)
    w2 = 0.1 * jax.random.normal(keys[6], (Cout, Cout, 3, 3), jnp.float32)
    cb2 = 0.1 * jax.random.normal(keys[7], (Cout,), jnp.float32)
    # shortcut 1x1 conv (used because Cin != Cout, matching the module)
    ws = 0.1 * jax.random.normal(keys[8], (Cout, Cin, 1, 1), jnp.float32)
    sb = 0.1 * jax.random.normal(keys[9], (Cout,), jnp.float32)

    # embedding lookup (glue, plain JAX)
    gamma1, beta1 = g1_embed[noise_labels], b1_embed[noise_labels]
    gamma2, beta2 = g2_embed[noise_labels], b2_embed[noise_labels]

    out = cond_resblock(x, gamma1, beta1, gamma2, beta2,
                        w1, cb1, w2, cb2, ws, sb)
    out = jax.block_until_ready(out)

    ref = _ref_forward(x, gamma1, beta1, gamma2, beta2,
                       w1, cb1, w2, cb2, ws, sb)
    assert out.shape == (N, Cout, H, W)
    # tolerance covers f32 reduction-order + bf16 matmul-operand rounding
    assert jnp.allclose(out, ref, rtol=1e-2, atol=1e-2), "mismatch vs JAX reference"

    print("KERNEL_OK")
</pallas_src>

<mosaic_0001>
module attributes {stable_mosaic.version = 11 : i64} {
  func.func @_cond_resblock_kernel(%arg0: i32, %arg1: memref<1x16x256xf32, #tpu.memory_space<vmem>>, %arg2: memref<1x16x1xf32, #tpu.memory_space<vmem>>, %arg3: memref<1x16x1xf32, #tpu.memory_space<vmem>>, %arg4: memref<1x16x1xf32, #tpu.memory_space<vmem>>, %arg5: memref<1x16x1xf32, #tpu.memory_space<vmem>>, %arg6: memref<9x1x256xf32, #tpu.memory_space<vmem>>, %arg7: memref<16x144xbf16, #tpu.memory_space<vmem>>, %arg8: memref<1x16x1xf32, #tpu.memory_space<vmem>>, %arg9: memref<16x144xbf16, #tpu.memory_space<vmem>>, %arg10: memref<1x16x1xf32, #tpu.memory_space<vmem>>, %arg11: memref<16x16xbf16, #tpu.memory_space<vmem>>, %arg12: memref<1x16x1xf32, #tpu.memory_space<vmem>>, %arg13: memref<1x16x256xf32, #tpu.memory_space<vmem>>) attributes {dimension_semantics = [#tpu.dimension_semantics<parallel>], iteration_bounds = array<i64: 2>, scalar_prefetch = 0 : i64, scratch_operands = 0 : i64, tpu.core_type = #tpu.core_type<tc>, window_params = [{transform_indices = @transform_0, window_bounds = array<i64: 1, 16, 256>}, {transform_indices = @transform_1, window_bounds = array<i64: 1, 16, 1>}, {transform_indices = @transform_2, window_bounds = array<i64: 1, 16, 1>}, {transform_indices = @transform_3, window_bounds = array<i64: 1, 16, 1>}, {transform_indices = @transform_4, window_bounds = array<i64: 1, 16, 1>}, {pipeline_mode = #tpu.pipeline_mode<synchronous>, transform_indices = @transform_5, window_bounds = array<i64: 9, 1, 256>}, {pipeline_mode = #tpu.pipeline_mode<synchronous>, transform_indices = @transform_6, window_bounds = array<i64: 16, 144>}, {pipeline_mode = #tpu.pipeline_mode<synchronous>, transform_indices = @transform_7, window_bounds = array<i64: 1, 16, 1>}, {pipeline_mode = #tpu.pipeline_mode<synchronous>, transform_indices = @transform_8, window_bounds = array<i64: 16, 144>}, {pipeline_mode = #tpu.pipeline_mode<synchronous>, transform_indices = @transform_9, window_bounds = array<i64: 1, 16, 1>}, {pipeline_mode = #tpu.pipeline_mode<synchronous>, transform_indices = @transform_10, window_bounds = array<i64: 16, 16>}, {pipeline_mode = #tpu.pipeline_mode<synchronous>, transform_indices = @transform_11, window_bounds = array<i64: 1, 16, 1>}, {transform_indices = @transform_12, window_bounds = array<i64: 1, 16, 256>}]} {
    %c0 = arith.constant 0 : index
    %c0_0 = arith.constant 0 : index
    %c0_1 = arith.constant 0 : index
    %0 = vector.load %arg6[%c0, %c0_0, %c0_1] : memref<9x1x256xf32, #tpu.memory_space<vmem>>, vector<9x1x256xf32>
    %c0_2 = arith.constant 0 : index
    %c0_3 = arith.constant 0 : index
    %c0_4 = arith.constant 0 : index
    %1 = vector.load %arg1[%c0_2, %c0_3, %c0_4] : memref<1x16x256xf32, #tpu.memory_space<vmem>>, vector<1x16x256xf32>
    %c0_5 = arith.constant 0 : index
    %c0_6 = arith.constant 0 : index
    %c0_7 = arith.constant 0 : index
    %2 = vector.load %arg2[%c0_5, %c0_6, %c0_7] : memref<1x16x1xf32, #tpu.memory_space<vmem>>, vector<1x16x1xf32>
    %c0_8 = arith.constant 0 : index
    %c0_9 = arith.constant 0 : index
    %c0_10 = arith.constant 0 : index
    %3 = vector.load %arg3[%c0_8, %c0_9, %c0_10] : memref<1x16x1xf32, #tpu.memory_space<vmem>>, vector<1x16x1xf32>
    %cst = arith.constant dense<0.000000e+00> : vector<1x16xf32>
    %4 = vector.multi_reduction <add>, %1, %cst [2] : vector<1x16x256xf32> to vector<1x16xf32>
    %5 = vector.shape_cast %4 : vector<1x16xf32> to vector<1x16x1xf32>
    %6 = arith.mulf %1, %1 : vector<1x16x256xf32>
    %cst_11 = arith.constant dense<0.000000e+00> : vector<1x16xf32>
    %7 = vector.multi_reduction <add>, %6, %cst_11 [2] : vector<1x16x256xf32> to vector<1x16xf32>
    %8 = vector.shape_cast %7 : vector<1x16xf32> to vector<1x16x1xf32>
    %cst_12 = arith.constant 3.906250e-03 : f32
    %9 = vector.broadcast %cst_12 : f32 to vector<1x16x1xf32>
    %10 = arith.mulf %5, %9 : vector<1x16x1xf32>
    %cst_13 = arith.constant 3.906250e-03 : f32
    %11 = vector.broadcast %cst_13 : f32 to vector<1x16x1xf32>
    %12 = arith.mulf %8, %11 : vector<1x16x1xf32>
    %13 = arith.mulf %10, %10 : vector<1x16x1xf32>
    %14 = arith.subf %12, %13 : vector<1x16x1xf32>
    %cst_14 = arith.constant 0.000000e+00 : f32
    %15 = vector.broadcast %cst_14 : f32 to vector<1x16x1xf32>
    %16 = arith.maximumf %14, %15 : vector<1x16x1xf32>
    %17 = vector.broadcast %10 : vector<1x16x1xf32> to vector<1x16x256xf32>
    %18 = arith.subf %1, %17 : vector<1x16x256xf32>
    %cst_15 = arith.constant 9.99999974E-6 : f32
    %19 = vector.broadcast %cst_15 : f32 to vector<1x16x1xf32>
    %20 = arith.addf %16, %19 : vector<1x16x1xf32>
    %21 = math.rsqrt %20 : vector<1x16x1xf32>
    %22 = vector.broadcast %21 : vector<1x16x1xf32> to vector<1x16x256xf32>
    %23 = arith.mulf %18, %22 : vector<1x16x256xf32>
    %24 = vector.broadcast %2 : vector<1x16x1xf32> to vector<1x16x256xf32>
    %25 = arith.mulf %23, %24 : vector<1x16x256xf32>
    %26 = vector.broadcast %3 : vector<1x16x1xf32> to vector<1x16x256xf32>
    %27 = arith.addf %25, %26 : vector<1x16x256xf32>
    %cst_16 = arith.constant 0.000000e+00 : f32
    %28 = vector.broadcast %cst_16 : f32 to vector<1x16x256xf32>
    %29 = arith.cmpf ogt, %27, %28 : vector<1x16x256xf32>
    %30 = math.exp %27 : vector<1x16x256xf32>
    %cst_17 = arith.constant 1.000000e+00 : f32
    %31 = vector.broadcast %cst_17 : f32 to vector<1x16x256xf32>
    %32 = arith.subf %30, %31 : vector<1x16x256xf32>
    %33 = arith.select %29, %27, %32 : vector<1x16x256xi1>, vector<1x16x256xf32>
    %c0_18 = arith.constant 0 : index
    %c0_19 = arith.constant 0 : index
    %34 = vector.load %arg7[%c0_18, %c0_19] : memref<16x144xbf16, #tpu.memory_space<vmem>>, vector<16x144xbf16>
    %35 = vector.shape_cast %33 : vector<1x16x256xf32> to vector<16x256xf32>
    %c17_i32 = arith.constant 17 : i32
    %36 = tpu.dynamic_rotate %35 by %c17_i32 dim 1 : vector<16x256xf32>, i32 -> vector<16x256xf32>
    %37 = vector.extract_strided_slice %0 {offsets = [0, 0, 0], sizes = [1, 1, 256], strides = [1, 1, 1]} : vector<9x1x256xf32> to vector<1x1x256xf32>
    %38 = vector.shape_cast %37 : vector<1x1x256xf32> to vector<1x256xf32>
    %39 = vector.broadcast %38 : vector<1x256xf32> to vector<16x256xf32>
    %40 = arith.mulf %36, %39 : vector<16x256xf32>
    %41 = arith.truncf %40 : vector<16x256xf32> to vector<16x256xbf16>
    %c16_i32 = arith.constant 16 : i32
    %42 = tpu.dynamic_rotate %35 by %c16_i32 dim 1 : vector<16x256xf32>, i32 -> vector<16x256xf32>
    %43 = vector.extract_strided_slice %0 {offsets = [1, 0, 0], sizes = [1, 1, 256], strides = [1, 1, 1]} : vector<9x1x256xf32> to vector<1x1x256xf32>
    %44 = vector.shape_cast %43 : vector<1x1x256xf32> to vector<1x256xf32>
    %45 = vector.broadcast %44 : vector<1x256xf32> to vector<16x256xf32>
    %46 = arith.mulf %42, %45 : vector<16x256xf32>
    %47 = arith.truncf %46 : vector<16x256xf32> to vector<16x256xbf16>
    %c15_i32 = arith.constant 15 : i32
    %48 = tpu.dynamic_rotate %35 by %c15_i32 dim 1 : vector<16x256xf32>, i32 -> vector<16x256xf32>
    %49 = vector.extract_strided_slice %0 {offsets = [2, 0, 0], sizes = [1, 1, 256], strides = [1, 1, 1]} : vector<9x1x256xf32> to vector<1x1x256xf32>
    %50 = vector.shape_cast %49 : vector<1x1x256xf32> to vector<1x256xf32>
    %51 = vector.broadcast %50 : vector<1x256xf32> to vector<16x256xf32>
    %52 = arith.mulf %48, %51 : vector<16x256xf32>
    %53 = arith.truncf %52 : vector<16x256xf32> to vector<16x256xbf16>
    %c1_i32 = arith.constant 1 : i32
    %54 = tpu.dynamic_rotate %35 by %c1_i32 dim 1 : vector<16x256xf32>, i32 -> vector<16x256xf32>
    %55 = vector.extract_strided_slice %0 {offsets = [3, 0, 0], sizes = [1, 1, 256], strides = [1, 1, 1]} : vector<9x1x256xf32> to vector<1x1x256xf32>
    %56 = vector.shape_cast %55 : vector<1x1x256xf32> to vector<1x256xf32>
    %57 = vector.broadcast %56 : vector<1x256xf32> to vector<16x256xf32>
    %58 = arith.mulf %54, %57 : vector<16x256xf32>
    %59 = arith.truncf %58 : vector<16x256xf32> to vector<16x256xbf16>
    %60 = arith.truncf %35 : vector<16x256xf32> to vector<16x256xbf16>
    %c255_i32 = arith.constant 255 : i32
    %61 = tpu.dynamic_rotate %35 by %c255_i32 dim 1 : vector<16x256xf32>, i32 -> vector<16x256xf32>
    %62 = vector.extract_strided_slice %0 {offsets = [5, 0, 0], sizes = [1, 1, 256], strides = [1, 1, 1]} : vector<9x1x256xf32> to vector<1x1x256xf32>
    %63 = vector.shape_cast %62 : vector<1x1x256xf32> to vector<1x256xf32>
    %64 = vector.broadcast %63 : vector<1x256xf32> to vector<16x256xf32>
    %65 = arith.mulf %61, %64 : vector<16x256xf32>
    %66 = arith.truncf %65 : vector<16x256xf32> to vector<16x256xbf16>
    %c241_i32 = arith.constant 241 : i32
    %67 = tpu.dynamic_rotate %35 by %c241_i32 dim 1 : vector<16x256xf32>, i32 -> vector<16x256xf32>
    %68 = vector.extract_strided_slice %0 {offsets = [6, 0, 0], sizes = [1, 1, 256], strides = [1, 1, 1]} : vector<9x1x256xf32> to vector<1x1x256xf32>
    %69 = vector.shape_cast %68 : vector<1x1x256xf32> to vector<1x256xf32>
    %70 = vector.broadcast %69 : vector<1x256xf32> to vector<16x256xf32>
    %71 = arith.mulf %67, %70 : vector<16x256xf32>
    %72 = arith.truncf %71 : vector<16x256xf32> to vector<16x256xbf16>
    %c240_i32 = arith.constant 240 : i32
    %73 = tpu.dynamic_rotate %35 by %c240_i32 dim 1 : vector<16x256xf32>, i32 -> vector<16x256xf32>
    %74 = vector.extract_strided_slice %0 {offsets = [7, 0, 0], sizes = [1, 1, 256], strides = [1, 1, 1]} : vector<9x1x256xf32> to vector<1x1x256xf32>
    %75 = vector.shape_cast %74 : vector<1x1x256xf32> to vector<1x256xf32>
    %76 = vector.broadcast %75 : vector<1x256xf32> to vector<16x256xf32>
    %77 = arith.mulf %73, %76 : vector<16x256xf32>
    %78 = arith.truncf %77 : vector<16x256xf32> to vector<16x256xbf16>
    %c239_i32 = arith.constant 239 : i32
    %79 = tpu.dynamic_rotate %35 by %c239_i32 dim 1 : vector<16x256xf32>, i32 -> vector<16x256xf32>
    %80 = vector.extract_strided_slice %0 {offsets = [8, 0, 0], sizes = [1, 1, 256], strides = [1, 1, 1]} : vector<9x1x256xf32> to vector<1x1x256xf32>
    %81 = vector.shape_cast %80 : vector<1x1x256xf32> to vector<1x256xf32>
    %82 = vector.broadcast %81 : vector<1x256xf32> to vector<16x256xf32>
    %83 = arith.mulf %79, %82 : vector<16x256xf32>
    %84 = arith.truncf %83 : vector<16x256xf32> to vector<16x256xbf16>
    %85 = tpu.concatenate %41, %47, %53, %59, %60, %66, %72, %78, %84 in 0 : vector<16x256xbf16>, vector<16x256xbf16>, vector<16x256xbf16>, vector<16x256xbf16>, vector<16x256xbf16>, vector<16x256xbf16>, vector<16x256xbf16>, vector<16x256xbf16>, vector<16x256xbf16> -> vector<144x256xbf16>
    %cst_20 = arith.constant dense<0.000000e+00> : vector<16x256xf32>
    %86 = tpu.matmul %34, %85, %cst_20 {dimension_numbers = #tpu.dot_dimension_numbers<[1], [0], [0], [1], [0, 0, 1, 1], [], []>} : vector<16x144xbf16>, vector<144x256xbf16>, vector<16x256xf32> -> vector<16x256xf32>
    %87 = vector.shape_cast %86 : vector<16x256xf32> to vector<1x16x256xf32>
    %c0_21 = arith.constant 0 : index
    %c0_22 = arith.constant 0 : index
    %c0_23 = arith.constant 0 : index
    %88 = vector.load %arg8[%c0_21, %c0_22, %c0_23] : memref<1x16x1xf32, #tpu.memory_space<vmem>>, vector<1x16x1xf32>
    %89 = vector.broadcast %88 : vector<1x16x1xf32> to vector<1x16x256xf32>
    %90 = arith.addf %87, %89 : vector<1x16x256xf32>
    %c0_24 = arith.constant 0 : index
    %c0_25 = arith.constant 0 : index
    %c0_26 = arith.constant 0 : index
    %91 = vector.load %arg4[%c0_24, %c0_25, %c0_26] : memref<1x16x1xf32, #tpu.memory_space<vmem>>, vector<1x16x1xf32>
    %c0_27 = arith.constant 0 : index
    %c0_28 = arith.constant 0 : index
    %c0_29 = arith.constant 0 : index
    %92 = vector.load %arg5[%c0_27, %c0_28, %c0_29] : memref<1x16x1xf32, #tpu.memory_space<vmem>>, vector<1x16x1xf32>
    %cst_30 = arith.constant dense<0.000000e+00> : vector<1x16xf32>
    %93 = vector.multi_reduction <add>, %90, %cst_30 [2] : vector<1x16x256xf32> to vector<1x16xf32>
    %94 = vector.shape_cast %93 : vector<1x16xf32> to vector<1x16x1xf32>
    %95 = arith.mulf %90, %90 : vector<1x16x256xf32>
    %cst_31 = arith.constant dense<0.000000e+00> : vector<1x16xf32>
    %96 = vector.multi_reduction <add>, %95, %cst_31 [2] : vector<1x16x256xf32> to vector<1x16xf32>
    %97 = vector.shape_cast %96 : vector<1x16xf32> to vector<1x16x1xf32>
    %cst_32 = arith.constant 3.906250e-03 : f32
    %98 = vector.broadcast %cst_32 : f32 to vector<1x16x1xf32>
    %99 = arith.mulf %94, %98 : vector<1x16x1xf32>
    %cst_33 = arith.constant 3.906250e-03 : f32
    %100 = vector.broadcast %cst_33 : f32 to vector<1x16x1xf32>
    %101 = arith.mulf %97, %100 : vector<1x16x1xf32>
    %102 = arith.mulf %99, %99 : vector<1x16x1xf32>
    %103 = arith.subf %101, %102 : vector<1x16x1xf32>
    %cst_34 = arith.constant 0.000000e+00 : f32
    %104 = vector.broadcast %cst_34 : f32 to vector<1x16x1xf32>
    %105 = arith.maximumf %103, %104 : vector<1x16x1xf32>
    %106 = vector.broadcast %99 : vector<1x16x1xf32> to vector<1x16x256xf32>
    %107 = arith.subf %90, %106 : vector<1x16x256xf32>
    %cst_35 = arith.constant 9.99999974E-6 : f32
    %108 = vector.broadcast %cst_35 : f32 to vector<1x16x1xf32>
    %109 = arith.addf %105, %108 : vector<1x16x1xf32>
    %110 = math.rsqrt %109 : vector<1x16x1xf32>
    %111 = vector.broadcast %110 : vector<1x16x1xf32> to vector<1x16x256xf32>
    %112 = arith.mulf %107, %111 : vector<1x16x256xf32>
    %113 = vector.broadcast %91 : vector<1x16x1xf32> to vector<1x16x256xf32>
    %114 = arith.mulf %112, %113 : vector<1x16x256xf32>
    %115 = vector.broadcast %92 : vector<1x16x1xf32> to vector<1x16x256xf32>
    %116 = arith.addf %114, %115 : vector<1x16x256xf32>
    %cst_36 = arith.constant 0.000000e+00 : f32
    %117 = vector.broadcast %cst_36 : f32 to vector<1x16x256xf32>
    %118 = arith.cmpf ogt, %116, %117 : vector<1x16x256xf32>
    %119 = math.exp %116 : vector<1x16x256xf32>
    %cst_37 = arith.constant 1.000000e+00 : f32
    %120 = vector.broadcast %cst_37 : f32 to vector<1x16x256xf32>
    %121 = arith.subf %119, %120 : vector<1x16x256xf32>
    %122 = arith.select %118, %116, %121 : vector<1x16x256xi1>, vector<1x16x256xf32>
    %c0_38 = arith.constant 0 : index
    %c0_39 = arith.constant 0 : index
    %123 = vector.load %arg9[%c0_38, %c0_39] : memref<16x144xbf16, #tpu.memory_space<vmem>>, vector<16x144xbf16>
    %124 = vector.shape_cast %122 : vector<1x16x256xf32> to vector<16x256xf32>
    %c17_i32_40 = arith.constant 17 : i32
    %125 = tpu.dynamic_rotate %124 by %c17_i32_40 dim 1 : vector<16x256xf32>, i32 -> vector<16x256xf32>
    %126 = vector.extract_strided_slice %0 {offsets = [0, 0, 0], sizes = [1, 1, 256], strides = [1, 1, 1]} : vector<9x1x256xf32> to vector<1x1x256xf32>
    %127 = vector.shape_cast %126 : vector<1x1x256xf32> to vector<1x256xf32>
    %128 = vector.broadcast %127 : vector<1x256xf32> to vector<16x256xf32>
    %129 = arith.mulf %125, %128 : vector<16x256xf32>
    %130 = arith.truncf %129 : vector<16x256xf32> to vector<16x256xbf16>
    %c16_i32_41 = arith.constant 16 : i32
    %131 = tpu.dynamic_rotate %124 by %c16_i32_41 dim 1 : vector<16x256xf32>, i32 -> vector<16x256xf32>
    %132 = vector.extract_strided_slice %0 {offsets = [1, 0, 0], sizes = [1, 1, 256], strides = [1, 1, 1]} : vector<9x1x256xf32> to vector<1x1x256xf32>
    %133 = vector.shape_cast %132 : vector<1x1x256xf32> to vector<1x256xf32>
    %134 = vector.broadcast %133 : vector<1x256xf32> to vector<16x256xf32>
    %135 = arith.mulf %131, %134 : vector<16x256xf32>
    %136 = arith.truncf %135 : vector<16x256xf32> to vector<16x256xbf16>
    %c15_i32_42 = arith.constant 15 : i32
    %137 = tpu.dynamic_rotate %124 by %c15_i32_42 dim 1 : vector<16x256xf32>, i32 -> vector<16x256xf32>
    %138 = vector.extract_strided_slice %0 {offsets = [2, 0, 0], sizes = [1, 1, 256], strides = [1, 1, 1]} : vector<9x1x256xf32> to vector<1x1x256xf32>
    %139 = vector.shape_cast %138 : vector<1x1x256xf32> to vector<1x256xf32>
    %140 = vector.broadcast %139 : vector<1x256xf32> to vector<16x256xf32>
    %141 = arith.mulf %137, %140 : vector<16x256xf32>
    %142 = arith.truncf %141 : vector<16x256xf32> to vector<16x256xbf16>
    %c1_i32_43 = arith.constant 1 : i32
    %143 = tpu.dynamic_rotate %124 by %c1_i32_43 dim 1 : vector<16x256xf32>, i32 -> vector<16x256xf32>
    %144 = vector.extract_strided_slice %0 {offsets = [3, 0, 0], sizes = [1, 1, 256], strides = [1, 1, 1]} : vector<9x1x256xf32> to vector<1x1x256xf32>
    %145 = vector.shape_cast %144 : vector<1x1x256xf32> to vector<1x256xf32>
    %146 = vector.broadcast %145 : vector<1x256xf32> to vector<16x256xf32>
    %147 = arith.mulf %143, %146 : vector<16x256xf32>
    %148 = arith.truncf %147 : vector<16x256xf32> to vector<16x256xbf16>
    %149 = arith.truncf %124 : vector<16x256xf32> to vector<16x256xbf16>
    %c255_i32_44 = arith.constant 255 : i32
    %150 = tpu.dynamic_rotate %124 by %c255_i32_44 dim 1 : vector<16x256xf32>, i32 -> vector<16x256xf32>
    %151 = vector.extract_strided_slice %0 {offsets = [5, 0, 0], sizes = [1, 1, 256], strides = [1, 1, 1]} : vector<9x1x256xf32> to vector<1x1x256xf32>
    %152 = vector.shape_cast %151 : vector<1x1x256xf32> to vector<1x256xf32>
    %153 = vector.broadcast %152 : vector<1x256xf32> to vector<16x256xf32>
    %154 = arith.mulf %150, %153 : vector<16x256xf32>
    %155 = arith.truncf %154 : vector<16x256xf32> to vector<16x256xbf16>
    %c241_i32_45 = arith.constant 241 : i32
    %156 = tpu.dynamic_rotate %124 by %c241_i32_45 dim 1 : vector<16x256xf32>, i32 -> vector<16x256xf32>
    %157 = vector.extract_strided_slice %0 {offsets = [6, 0, 0], sizes = [1, 1, 256], strides = [1, 1, 1]} : vector<9x1x256xf32> to vector<1x1x256xf32>
    %158 = vector.shape_cast %157 : vector<1x1x256xf32> to vector<1x256xf32>
    %159 = vector.broadcast %158 : vector<1x256xf32> to vector<16x256xf32>
    %160 = arith.mulf %156, %159 : vector<16x256xf32>
    %161 = arith.truncf %160 : vector<16x256xf32> to vector<16x256xbf16>
    %c240_i32_46 = arith.constant 240 : i32
    %162 = tpu.dynamic_rotate %124 by %c240_i32_46 dim 1 : vector<16x256xf32>, i32 -> vector<16x256xf32>
    %163 = vector.extract_strided_slice %0 {offsets = [7, 0, 0], sizes = [1, 1, 256], strides = [1, 1, 1]} : vector<9x1x256xf32> to vector<1x1x256xf32>
    %164 = vector.shape_cast %163 : vector<1x1x256xf32> to vector<1x256xf32>
    %165 = vector.broadcast %164 : vector<1x256xf32> to vector<16x256xf32>
    %166 = arith.mulf %162, %165 : vector<16x256xf32>
    %167 = arith.truncf %166 : vector<16x256xf32> to vector<16x256xbf16>
    %c239_i32_47 = arith.constant 239 : i32
    %168 = tpu.dynamic_rotate %124 by %c239_i32_47 dim 1 : vector<16x256xf32>, i32 -> vector<16x256xf32>
    %169 = vector.extract_strided_slice %0 {offsets = [8, 0, 0], sizes = [1, 1, 256], strides = [1, 1, 1]} : vector<9x1x256xf32> to vector<1x1x256xf32>
    %170 = vector.shape_cast %169 : vector<1x1x256xf32> to vector<1x256xf32>
    %171 = vector.broadcast %170 : vector<1x256xf32> to vector<16x256xf32>
    %172 = arith.mulf %168, %171 : vector<16x256xf32>
    %173 = arith.truncf %172 : vector<16x256xf32> to vector<16x256xbf16>
    %174 = tpu.concatenate %130, %136, %142, %148, %149, %155, %161, %167, %173 in 0 : vector<16x256xbf16>, vector<16x256xbf16>, vector<16x256xbf16>, vector<16x256xbf16>, vector<16x256xbf16>, vector<16x256xbf16>, vector<16x256xbf16>, vector<16x256xbf16>, vector<16x256xbf16> -> vector<144x256xbf16>
    %cst_48 = arith.constant dense<0.000000e+00> : vector<16x256xf32>
    %175 = tpu.matmul %123, %174, %cst_48 {dimension_numbers = #tpu.dot_dimension_numbers<[1], [0], [0], [1], [0, 0, 1, 1], [], []>} : vector<16x144xbf16>, vector<144x256xbf16>, vector<16x256xf32> -> vector<16x256xf32>
    %176 = vector.shape_cast %175 : vector<16x256xf32> to vector<1x16x256xf32>
    %c0_49 = arith.constant 0 : index
    %c0_50 = arith.constant 0 : index
    %c0_51 = arith.constant 0 : index
    %177 = vector.load %arg10[%c0_49, %c0_50, %c0_51] : memref<1x16x1xf32, #tpu.memory_space<vmem>>, vector<1x16x1xf32>
    %178 = vector.broadcast %177 : vector<1x16x1xf32> to vector<1x16x256xf32>
    %179 = arith.addf %176, %178 : vector<1x16x256xf32>
    %c0_52 = arith.constant 0 : index
    %c0_53 = arith.constant 0 : index
    %180 = vector.load %arg11[%c0_52, %c0_53] : memref<16x16xbf16, #tpu.memory_space<vmem>>, vector<16x16xbf16>
    %c0_54 = arith.constant 0 : index
    %c0_55 = arith.constant 0 : index
    %c0_56 = arith.constant 0 : index
    %181 = vector.load %arg1[%c0_54, %c0_55, %c0_56] : memref<1x16x256xf32, #tpu.memory_space<vmem>>, vector<1x16x256xf32>
    %182 = arith.truncf %181 : vector<1x16x256xf32> to vector<1x16x256xbf16>
    %183 = vector.shape_cast %182 : vector<1x16x256xbf16> to vector<16x256xbf16>
    %cst_57 = arith.constant dense<0.000000e+00> : vector<16x256xf32>
    %184 = tpu.matmul %180, %183, %cst_57 {dimension_numbers = #tpu.dot_dimension_numbers<[1], [0], [0], [1], [0, 0, 1, 1], [], []>} : vector<16x16xbf16>, vector<16x256xbf16>, vector<16x256xf32> -> vector<16x256xf32>
    %185 = vector.shape_cast %184 : vector<16x256xf32> to vector<1x16x256xf32>
    %c0_58 = arith.constant 0 : index
    %c0_59 = arith.constant 0 : index
    %c0_60 = arith.constant 0 : index
    %186 = vector.load %arg12[%c0_58, %c0_59, %c0_60] : memref<1x16x1xf32, #tpu.memory_space<vmem>>, vector<1x16x1xf32>
    %187 = vector.broadcast %186 : vector<1x16x1xf32> to vector<1x16x256xf32>
    %188 = arith.addf %185, %187 : vector<1x16x256xf32>
    %189 = arith.addf %179, %188 : vector<1x16x256xf32>
    %c0_61 = arith.constant 0 : index
    %c0_62 = arith.constant 0 : index
    %c0_63 = arith.constant 0 : index
    %190 = vector.load %arg13[%c0_61, %c0_62, %c0_63] : memref<1x16x256xf32, #tpu.memory_space<vmem>>, vector<1x16x256xf32>
    tpu.vector_store %arg13[%c0_61, %c0_62, %c0_63], %189 {strides = array<i32>} : memref<1x16x256xf32, #tpu.memory_space<vmem>>, vector<1x16x256xf32>,
    return
  }
  func.func @transform_0(%arg0: i32) -> (i32, i32, i32) {
    %c0_i32 = arith.constant 0 : i32
    %c0_i32_0 = arith.constant 0 : i32
    %c0_i32_1 = arith.constant 0 : i32
    return %arg0, %c0_i32, %c0_i32_0 : i32, i32, i32
  }
  func.func @transform_1(%arg0: i32) -> (i32, i32, i32) {
    %c0_i32 = arith.constant 0 : i32
    %c0_i32_0 = arith.constant 0 : i32
    %c0_i32_1 = arith.constant 0 : i32
    return %arg0, %c0_i32, %c0_i32_0 : i32, i32, i32
  }
  func.func @transform_2(%arg0: i32) -> (i32, i32, i32) {
    %c0_i32 = arith.constant 0 : i32
    %c0_i32_0 = arith.constant 0 : i32
    %c0_i32_1 = arith.constant 0 : i32
    return %arg0, %c0_i32, %c0_i32_0 : i32, i32, i32
  }
  func.func @transform_3(%arg0: i32) -> (i32, i32, i32) {
    %c0_i32 = arith.constant 0 : i32
    %c0_i32_0 = arith.constant 0 : i32
    %c0_i32_1 = arith.constant 0 : i32
    return %arg0, %c0_i32, %c0_i32_0 : i32, i32, i32
  }
  func.func @transform_4(%arg0: i32) -> (i32, i32, i32) {
    %c0_i32 = arith.constant 0 : i32
    %c0_i32_0 = arith.constant 0 : i32
    %c0_i32_1 = arith.constant 0 : i32
    return %arg0, %c0_i32, %c0_i32_0 : i32, i32, i32
  }
  func.func @transform_5(%arg0: i32) -> (i32, i32, i32) {
    %c0_i32 = arith.constant 0 : i32
    %c0_i32_0 = arith.constant 0 : i32
    %c0_i32_1 = arith.constant 0 : i32
    %c0_i32_2 = arith.constant 0 : i32
    return %c0_i32, %c0_i32_0, %c0_i32_1 : i32, i32, i32
  }
  func.func @transform_6(%arg0: i32) -> (i32, i32) {
    %c0_i32 = arith.constant 0 : i32
    %c0_i32_0 = arith.constant 0 : i32
    %c0_i32_1 = arith.constant 0 : i32
    return %c0_i32, %c0_i32_0 : i32, i32
  }
  func.func @transform_7(%arg0: i32) -> (i32, i32, i32) {
    %c0_i32 = arith.constant 0 : i32
    %c0_i32_0 = arith.constant 0 : i32
    %c0_i32_1 = arith.constant 0 : i32
    %c0_i32_2 = arith.constant 0 : i32
    return %c0_i32, %c0_i32_0, %c0_i32_1 : i32, i32, i32
  }
  func.func @transform_8(%arg0: i32) -> (i32, i32) {
    %c0_i32 = arith.constant 0 : i32
    %c0_i32_0 = arith.constant 0 : i32
    %c0_i32_1 = arith.constant 0 : i32
    return %c0_i32, %c0_i32_0 : i32, i32
  }
  func.func @transform_9(%arg0: i32) -> (i32, i32, i32) {
    %c0_i32 = arith.constant 0 : i32
    %c0_i32_0 = arith.constant 0 : i32
    %c0_i32_1 = arith.constant 0 : i32
    %c0_i32_2 = arith.constant 0 : i32
    return %c0_i32, %c0_i32_0, %c0_i32_1 : i32, i32, i32
  }
  func.func @transform_10(%arg0: i32) -> (i32, i32) {
    %c0_i32 = arith.constant 0 : i32
    %c0_i32_0 = arith.constant 0 : i32
    %c0_i32_1 = arith.constant 0 : i32
    return %c0_i32, %c0_i32_0 : i32, i32
  }
  func.func @transform_11(%arg0: i32) -> (i32, i32, i32) {
    %c0_i32 = arith.constant 0 : i32
    %c0_i32_0 = arith.constant 0 : i32
    %c0_i32_1 = arith.constant 0 : i32
    %c0_i32_2 = arith.constant 0 : i32
    return %c0_i32, %c0_i32_0, %c0_i32_1 : i32, i32, i32
  }
  func.func @transform_12(%arg0: i32) -> (i32, i32, i32) {
    %c0_i32 = arith.constant 0 : i32
    %c0_i32_0 = arith.constant 0 : i32
    %c0_i32_1 = arith.constant 0 : i32
    return %arg0, %c0_i32, %c0_i32_0 : i32, i32, i32
  }
}

</mosaic_0001>

<bundles_post_ra>
// kernel: tpu_custom_call.1
= control target key start
LH: loop header
LB: loop body
LE: loop exit
PB: predicated region body
PF: predicated region fallthrough
CT: control target
= control target key end

     0   :  { %s2315_s0 = inlined_call_operand.vmem [shape: f32[2,16,256], index: 0, kind: input, shape index: {}]   ;;  %s2316_s1 = inlined_call_operand.vmem [shape: f32[2,16,1], index: 1, kind: input, shape index: {}]   ;;  %s2317_s2 = inlined_call_operand.vmem [shape: f32[2,16,1], index: 2, kind: input, shape index: {}]   ;;  %s2318_s3 = inlined_call_operand.vmem [shape: f32[2,16,1], index: 3, kind: input, shape index: {}]   ;;  %s2319_s4 = inlined_call_operand.vmem [shape: f32[2,16,1], index: 4, kind: input, shape index: {}]   ;;  %s2320_s5 = inlined_call_operand.vmem [shape: f32[9,1,256], index: 5, kind: input, shape index: {}]   ;;  %s2321_s6 = inlined_call_operand.vmem [shape: bf16[16,144], index: 6, kind: input, shape index: {}]   ;;  %s2322_s7 = inlined_call_operand.vmem [shape: f32[1,16,1], index: 7, kind: input, shape index: {}]   ;;  %s2323_s8 = inlined_call_operand.vmem [shape: bf16[16,144], index: 8, kind: input, shape index: {}]   ;;  %s2324_s9 = inlined_call_operand.vmem [shape: f32[1,16,1], index: 9, kind: input, shape index: {}]   ;;  %s2325_s10 = inlined_call_operand.vmem [shape: bf16[16,16], index: 10, kind: input, shape index: {}]   ;;  %s2326_s11 = inlined_call_operand.vmem [shape: f32[1,16,1], index: 11, kind: input, shape index: {}]   ;;  %s2327_s12 = inlined_call_operand.hbm [shape: f32[2,16,256], index: 12, kind: output, shape index: {}]  }
   0x1   :  { %2340 = sst [smem:[#allocation5_spill]] %s2315_s0 }
   0x2   :  { %2341 = sst [smem:[#allocation6_spill]] %s2316_s1 }
   0x3   :  { %2342 = sst [smem:[#allocation7_spill]] %s2317_s2 }
   0x4   :  { %17 = vsyncpa [#allocation3], 0 }
   0x5   :  { %19 = vsyncpa [#allocation3 + $0x1], 0  ;;  %s1705_s21 = smov 0   ;;  %s1707_s22 = smov 0  }
   0x6   :  { %s1709_s23 = smov 0   ;;  %s1711_s24 = smov 0  }
   0x7 LB: > { %s1726_s25 = sadd.s32 4294967295, %s1627_s24   ;;  %s1425_s26 = sadd.s32 4294967294, %s1627_s24   ;;  %s1627_s24 = sphi %s1711_s24, %s2357_s24   ;;  %s1623_s23 = sphi %s1709_s23, %s2356_s23   ;;  %s1619_s22 = sphi %s1707_s22, %s2355_s22   ;;  %s1615_s21 = sphi %s1705_s21, %s2354_s21  }
   0x8   : > { %s1730_s27 = sadd.s32 1, %s1627_s24   ;;  %s309_s28 = sadd.s32 1, %s1623_s23 }
   0x9   : > { %s306_s29 = ssub.s32 %s1627_s24, %s1730_s27  ;;  %p319_p0 = scmp.ne.s32.totalorder %s1623_s23, %s1619_s22 }
   0xa   : > { %p307_p1 = scmp.eq.s32.totalorder %s306_s29, 0  ;;  %p320_p2 = scmp.eq.s32.totalorder %s1726_s25, 1 }
   0xb   : > { %p325_p3 = scmp.ne.s32.totalorder %s1619_s22, %s1615_s21  ;;  %p326_p4 = scmp.eq.s32.totalorder %s1425_s26, 1 }
   0xc   : > { %s1741_s30 = scalar_select %p307_p1, %s1623_s23, %s309_s28  }
   0xd   : > { %p1743_p5 = por %p320_p2, %p319_p0  ;;  %p1747_p6 = por %p326_p4, %p325_p3 }
   0xe   : > { %p1428_p7 = scmp.ge.s32.totalorder %s1627_s24, 1  ;;  %p405_p8 = scmp.lt.s32.totalorder %s1627_s24, 3 }
  0x10   : > { %p406_p9 = pnand %p1428_p7, %p405_p8 }
  0x11   : > { %p467_p10 = scmp.lt.s32.totalorder (!%p406_p9), %s1726_s25, 1  ;;  %v1629_v0 = vmov (!%p406_p9), 0   ;;  %s2345_s0 = sld [smem:[#allocation5_spill]] (!%p406_p9)  ;;  %vm850_vm4 = vcmask (!%p406_p9), 130048  }
  0x12   : > { %409 = sbr.rel (%p406_p9) target bundleno = 1245 (0x4dd), region = 68  ;;  %1529 = vset.pattern.permute.xlu1 (!%p406_p9), %v1629_v0  ;;  %1528 = vset.pattern.permute.xlu0 (!%p406_p9), %v1629_v0  ;;  %s2346_s1 = sld [smem:[#allocation6_spill]] (!%p406_p9) }
  0x13   : > { %s2347_s2 = sld [smem:[#allocation7_spill]] (!%p406_p9)  ;;  %s2334_s26 = smov (!%p406_p9), 16  }
  0x14   : > { %s2332_s28 = smov (!%p406_p9), 15   ;;  %s2338_s17 = smov (!%p406_p9), 113  }
  0x19   : > { %s468_s15 = scalar_select %p467_p10, %s1726_s25, 1 }
  0x1b   : > { %s1461_s16 = sshll.u32 %s468_s15, 5  ;;  %s1766_s20 = sshll.u32 %s468_s15, 4 }
  0x1c   : > { %s1760_s19 = scalar_lea.vmem %s2345_s0, %s1461_s16  ;;  %s476_s29 = scalar_lea.vmem %s2346_s1, %s1766_s20 }
  0x1d   : > { %v501_v1 = vld [vmem:[%s1760_s19] sm:$0xff]  ;;  %v502_v2 = vld [vmem:[%s1760_s19 + $0x8] sm:$0xff]  ;;  %v503_v3 = vld [vmem:[%s1760_s19 + $0x10] sm:$0xff]  ;;  %s481_s18 = scalar_lea.vmem %s2347_s2, %s1766_s20  ;;  %s2336_s15 = smov 17  }
  0x1e   : > { %v509_v4 = vadd.f32 %v502_v2, %v501_v1  ;;  %v515_v5 = vmul.f32 %v501_v1, %v501_v1  ;;  %v516_v6 = vmul.f32 %v502_v2, %v502_v2  ;;  %v504_v7 = vld [vmem:[%s1760_s19 + $0x18] sm:$0xff]  ;;  %v517_v8 = vmul.f32 %v503_v3, %v503_v3  ;;  %v506_v13 = vld [vmem:[%s476_s29 + $0x8] sm:$0xff]  ;;  %v505_v14 = vld [vmem:[%s476_s29] sm:$0xff]  ;;  %s2328_s29 = smov 1   ;;  %s2330_s16 = smov 127  }
  0x1f   : > { %v518_v9 = vmul.f32 %v504_v7, %v504_v7  ;;  %v512_v11 = vadd.f32 %v504_v7, %v503_v3  ;;  %v507_v15 = vld [vmem:[%s481_s18] sm:$0xff]  ;;  %v508_v16 = vld [vmem:[%s481_s18 + $0x8] sm:$0xff]  ;;  %s1636_s18 = smov 112   ;;  %s486_s0 = scalar_lea.vmem %s2318_s3, %s1766_s20 }
  0x20   : > { %510 = vadd.xlane.f32.xlu0 %v509_v4  ;;  %v519_v10 = vadd.f32 %v516_v6, %v515_v5  ;;  %s2349_s1 = smov 16  }
  0x21   : > { %v522_v12 = vadd.f32 %v518_v9, %v517_v8  ;;  %v898_v9 = vld [vmem:[%s2322_s7 + $0x8] sm:$0xff] }
  0x22   : > { %520 = vadd.xlane.f32.xlu1 %v519_v10  ;;  %v913_v10 = vld [vmem:[%s486_s0] sm:$0xff] }
  0x24   : > { %513 = vadd.xlane.f32.xlu0 %v512_v11  ;;  %v1532_v11 = vld [vmem:[%s2321_s6 + $0x4] ss:$8 sps:$4 sm:$0xff]  }
  0x25   : > { %1446 = vmatprep.mubr.msk.bf16.mxu0 %vm850_vm4, %v1532_v11 }
  0x26   : > { %523 = vadd.xlane.f32.xlu1 %v522_v12  ;;  %v897_v12 = vld [vmem:[%s2322_s7] sm:$0xff] }
  0x37   : > { %554 = vperm.xlu1 %1529, %v506_v13   ;;  %v914_v13 = vld [vmem:[%s486_s0 + $0x8] sm:$0xff]  ;;  %s2351_s0 = smov 1  }
  0x3a   : > { %549 = vperm.xlu0 %1528, %v505_v14   ;;  %v605_v14 = vlaneseq }
  0x3b   : > { %563 = vperm.xlu1 %1529, %v507_v15  }
  0x3f   : > { %568 = vperm.xlu1 %1529, %v508_v16   ;;  %v614_v16 = vshrl.u32 %v605_v14, 7 }
  0xad   : > { %v511_v17 = vpop.xlane.xlu0 %510 }
  0xae   : > { %v525_v18 = vmul.f32 0.00390625, %v511_v17 }
  0xaf   : > { %v521_v19 = vpop.xlane.xlu1 %520 }
  0xb0   : > { %v527_v20 = vmul.f32 0.00390625, %v521_v19  ;;  %v529_v21 = vmul.f32 %v525_v18, %v525_v18  ;;  %v535_v34 = vsub.f32 %v501_v1, %v525_v18  ;;  %v536_v35 = vsub.f32 %v502_v2, %v525_v18 }
  0xb1   : > { %v514_v22 = vpop.xlane.xlu0 %513  ;;  %v1864_v19 = vand.u32 127, %v605_v14 }
  0xb2   : > { %v531_v23 = vsub.f32 %v527_v20, %v529_v21  ;;  %v526_v24 = vmul.f32 0.00390625, %v514_v22  ;;  %v1866_v20 = vsub.s32 0, %v614_v16  ;;  %v1868_v21 = vsub.s32 1, %v614_v16  ;;  %v493_v22 = vld [vmem:[%s2320_s5] sm:$0x3] }
  0xb3   : > { %v524_v25 = vpop.xlane.xlu1 %523  ;;  %vm607_vm5 = vcmp.lt.s32.totalorder %v1864_v19, 17  ;;  %vm637_vm6 = vcmp.lt.s32.totalorder %v1864_v19, 16  ;;  %vm667_vm7 = vcmp.lt.s32.totalorder %v1864_v19, 15  ;;  %vm697_vm8 = vcmp.lt.s32.totalorder %v1864_v19, 1 }
  0xb4   : > { %v533_v26 = vmax.f32 %v531_v23, 0.0  ;;  %v528_v27 = vmul.f32 0.00390625, %v524_v25  ;;  %v530_v28 = vmul.f32 %v526_v24, %v526_v24  ;;  %v537_v43 = vsub.f32 %v503_v3, %v526_v24 }
  0xb5   : > { %v538_v44 = vsub.f32 %v504_v7, %v526_v24  ;;  %v1875_v25 = vrot.slane %v493_v22, %v1866_v20  ;;  %vm729_vm9 = vcmp.lt.s32.totalorder %v1864_v19, 127  ;;  %vm759_vm10 = vcmp.lt.s32.totalorder %v1864_v19, 113 }
  0xb6   : > { %v539_v29 = vadd.f32 1e-05, %v533_v26  ;;  %v532_v30 = vsub.f32 %v528_v27, %v530_v28  ;;  %v1878_v26 = vrot.slane %v493_v22, %v1868_v21  ;;  %vm789_vm11 = vcmp.lt.s32.totalorder %v1864_v19, 112 }
  0xb7   : > { %v555_v33 = vpop.permute.xlu1 %554  ;;  %vm819_vm12 = vcmp.lt.s32.totalorder %v1864_v19, 111  ;;  %v1533_v19 = vld [vmem:[%s2323_s8] ss:$8 sps:$4 sm:$0xff]  }
  0xb8   : > { %1537 = vrsqrt.f32 %v539_v29  ;;  %v534_v31 = vmax.f32 %v532_v30, 0.0 }
  0xb9   : > { %v550_v37 = vpop.permute.xlu0 %549 }
  0xba   : > { %v540_v32 = vadd.f32 1e-05, %v534_v31 }
  0xbb   : > { %v564_v40 = vpop.permute.xlu1 %563 }
  0xbc   : > { %1539 = vrsqrt.f32 %v540_v32 }
  0xbf   : > { %v569_v54 = vpop.permute.xlu1 %568 }
  0xc2   : > { %v1538_v36 = vpop.eup %1537 }
  0xc3   : > { %v543_v38 = vmul.f32 %v1538_v36, %v535_v34  ;;  %v544_v39 = vmul.f32 %v1538_v36, %v536_v35 }
  0xc5   : > { %v557_v41 = vmul.f32 %v550_v37, %v543_v38  ;;  %v558_v42 = vmul.f32 %v550_v37, %v544_v39  ;;  %v494_v37 = vld [vmem:[%s2320_s5 + $0x2] sm:$0x3] }
  0xc6   : > { %v1540_v45 = vpop.eup %1539 }
  0xc7   : > { %v571_v46 = vadd.f32 %v564_v40, %v557_v41  ;;  %v572_v47 = vadd.f32 %v564_v40, %v558_v42  ;;  %v545_v48 = vmul.f32 %v1540_v45, %v537_v43  ;;  %v546_v49 = vmul.f32 %v1540_v45, %v538_v44 }
  0xc8   : > { %v1897_v42 = vrot.slane %v494_v37, %v1866_v20  ;;  %v1900_v43 = vrot.slane %v494_v37, %v1868_v21 }
  0xc9   : > { %v579_v50 = vmul.f32 1.442695, %v571_v46  ;;  %v581_v51 = vmul.f32 1.442695, %v572_v47  ;;  %v559_v52 = vmul.f32 %v555_v33, %v545_v48  ;;  %v560_v53 = vmul.f32 %v555_v33, %v546_v49 }
  0xca   : > { %vm575_vm0 = vcmp.gt.f32.partialorder %v571_v46, 0.0  ;;  %vm576_vm3 = vcmp.gt.f32.partialorder %v572_v47, 0.0 }
  0xcb   : > { %1541 = vpow2.f32 %v579_v50  ;;  %v573_v55 = vadd.f32 %v569_v54, %v559_v52  ;;  %v574_v56 = vadd.f32 %v569_v54, %v560_v53  ;;  %v495_v54 = vld [vmem:[%s2320_s5 + $0x4] sm:$0x3] }
  0xcc   : > { %1543 = vpow2.f32 %v581_v51 }
  0xcd   : > { %v583_v57 = vmul.f32 1.442695, %v573_v55  ;;  %v585_v58 = vmul.f32 1.442695, %v574_v56  ;;  %vm577_vm1 = vcmp.gt.f32.partialorder %v573_v55, 0.0  ;;  %vm578_vm2 = vcmp.gt.f32.partialorder %v574_v56, 0.0 }
  0xcf   : > { %1545 = vpow2.f32 %v583_v57 }
  0xd0   : > { %1547 = vpow2.f32 %v585_v58 }
  0xd5   : > { %v1542_v59 = vpop.eup %1541 }
  0xd6   : > { %v1440_v60 = vadd.f32 -1.0, %v1542_v59  ;;  %v1544_v61 = vpop.eup %1543  ;;  %v1919_v59 = vrot.slane %v495_v54, %v1866_v20 }
  0xd7   : > { %v1441_v1 = vadd.f32 -1.0, %v1544_v61 }
  0xd8   : > { %v1776_v62 = vsel %vm575_vm0, %v571_v46, %v1440_v60  ;;  %v1922_v60 = vrot.slane %v495_v54, %v1868_v21 }
  0xd9   : > { %597 = vrot.lane.b32.xlu1 %v1776_v62, %s2336_s15  ;;  %v1546_v63 = vpop.eup %1545  ;;  %v1784_v7 = vsel %vm576_vm3, %v572_v47, %v1441_v1 }
  0xda   : > { %v1548_v2 = vpop.eup %1547  ;;  %v1442_v3 = vadd.f32 -1.0, %v1546_v63 }
  0xdb   : > { %v1443_v4 = vadd.f32 -1.0, %v1548_v2 }
  0xdc   : > { %v1780_v5 = vsel %vm577_vm1, %v573_v55, %v1442_v3 }
  0xdd   : > { %v1782_v6 = vsel %vm578_vm2, %v574_v56, %v1443_v4  ;;  %631 = vrot.lane.b32.xlu0 %v1780_v5, %s2334_s26  ;;  %599 = vrot.lane.b32.xlu1 %v1780_v5, %s2336_s15 }
  0xde   : > { %v720_v8 = vpack.c.bf16 %v1782_v6, %v1784_v7 }
  0xe1   : > { %635 = vrot.lane.b32.xlu0 %v1782_v6, %s2334_s26  ;;  %601 = vrot.lane.b32.xlu1 %v1784_v7, %s2336_s15 }
  0xe5   : > { %661 = vrot.lane.b32.xlu0 %v1780_v5, %s2332_s28  ;;  %603 = vrot.lane.b32.xlu1 %v1782_v6, %s2336_s15  ;;  %s1466_s15 = sshll.u32 %s1726_s25, 9 }
  0xe9   : > { %665 = vrot.lane.b32.xlu0 %v1782_v6, %s2332_s28  ;;  %629 = vrot.lane.b32.xlu1 %v1776_v62, %s2334_s26 }
  0xed   : > { %691 = vrot.lane.b32.xlu0 %v1780_v5, %s2328_s29  ;;  %633 = vrot.lane.b32.xlu1 %v1784_v7, %s2334_s26  ;;  %s491_s26 = scalar_lea.vmem %s2319_s4, %s1766_s20  ;;  %s2348_s20 = smov 17  }
  0xf1   : > { %695 = vrot.lane.b32.xlu0 %v1782_v6, %s2328_s29  ;;  %659 = vrot.lane.b32.xlu1 %v1776_v62, %s2332_s28 }
  0xf5   : > { %723 = vrot.lane.b32.xlu0 %v1780_v5, %s2330_s16  ;;  %663 = vrot.lane.b32.xlu1 %v1784_v7, %s2332_s28  ;;  %s2350_s28 = smov 15  }
  0xf9   : > { %727 = vrot.lane.b32.xlu0 %v1782_v6, %s2330_s16  ;;  %689 = vrot.lane.b32.xlu1 %v1776_v62, %s2328_s29 }
  0xfd   : > { %753 = vrot.lane.b32.xlu0 %v1780_v5, %s2338_s17  ;;  %693 = vrot.lane.b32.xlu1 %v1784_v7, %s2328_s29  ;;  %s1637_s29 = smov 111  }
 0x101   : > { %757 = vrot.lane.b32.xlu0 %v1782_v6, %s2338_s17  ;;  %721 = vrot.lane.b32.xlu1 %v1776_v62, %s2330_s16 }
 0x105   : > { %783 = vrot.lane.b32.xlu0 %v1780_v5, %s1636_s18  ;;  %725 = vrot.lane.b32.xlu1 %v1784_v7, %s2330_s16  ;;  %s2352_s16 = smov 127  }
 0x109   : > { %787 = vrot.lane.b32.xlu0 %v1782_v6, %s1636_s18  ;;  %751 = vrot.lane.b32.xlu1 %v1776_v62, %s2338_s17 }
 0x10d   : > { %813 = vrot.lane.b32.xlu0 %v1780_v5, %s1637_s29  ;;  %755 = vrot.lane.b32.xlu1 %v1784_v7, %s2338_s17  ;;  %s2353_s17 = smov 113  }
 0x111   : > { %817 = vrot.lane.b32.xlu0 %v1782_v6, %s1637_s29  ;;  %781 = vrot.lane.b32.xlu1 %v1776_v62, %s1636_s18  ;;  %v498_v6 = vld [vmem:[%s2320_s5 + $0xc] sm:$0x3] }
 0x115   : > { %906 = vperm.xlu0 %1528, %v898_v9   ;;  %785 = vrot.lane.b32.xlu1 %v1784_v7, %s1636_s18 }
 0x119   : > { %957 = vperm.xlu0 %1528, %v913_v10   ;;  %811 = vrot.lane.b32.xlu1 %v1776_v62, %s1637_s29 }
 0x11d   : > { %815 = vrot.lane.b32.xlu1 %v1784_v7, %s1637_s29 }
 0x121   : > { %901 = vperm.xlu1 %1529, %v897_v12  }
 0x125   : > { %962 = vperm.xlu1 %1529, %v914_v13   ;;  %v496_v13 = vld [vmem:[%s2320_s5 + $0x6] sm:$0x3] }
 0x126   : > { %v1944_v22 = vrot.slane %v496_v13, %v1868_v21 }
 0x14b   : > { %v598_v15 = vpop.permute.xlu1 %597 }
 0x14f   : > { %v600_v17 = vpop.permute.xlu1 %599  ;;  %v632_v18 = vpop.permute.xlu0 %631 }
 0x153   : > { %v602_v23 = vpop.permute.xlu1 %601  ;;  %v636_v24 = vpop.permute.xlu0 %635 }
 0x154   : > { %v608_v27 = vsel %vm607_vm5, %v598_v15, %v602_v23  ;;  %v610_v28 = vsel %vm607_vm5, %v602_v23, %v598_v15  ;;  %v639_v44 = vsel %vm637_vm6, %v632_v18, %v636_v24  ;;  %v641_v45 = vsel %vm637_vm6, %v636_v24, %v632_v18 }
 0x155   : > { %v623_v33 = vmul.f32 %v1875_v25, %v610_v28  ;;  %v624_v35 = vmul.f32 %v1878_v26, %v608_v27  ;;  %v655_v50 = vmul.f32 %v1897_v42, %v641_v45  ;;  %v656_v51 = vmul.f32 %v1900_v43, %v639_v44 }
 0x156   : > { %v1941_v18 = vrot.slane %v496_v13, %v1866_v20 }
 0x157   : > { %v604_v29 = vpop.permute.xlu1 %603  ;;  %v662_v30 = vpop.permute.xlu0 %661 }
 0x158   : > { %v609_v31 = vsel %vm607_vm5, %v600_v17, %v604_v29  ;;  %v611_v32 = vsel %vm607_vm5, %v604_v29, %v600_v17 }
 0x159   : > { %v625_v34 = vmul.f32 %v1875_v25, %v611_v32  ;;  %v626_v36 = vmul.f32 %v1878_v26, %v609_v31 }
 0x15b   : > { %v630_v38 = vpop.permute.xlu1 %629  ;;  %v666_v39 = vpop.permute.xlu0 %665  ;;  %v628_v40 = vpack.c.bf16 %v626_v36, %v624_v35  ;;  %v627_v41 = vpack.c.bf16 %v625_v34, %v623_v33  ;;  %v497_v35 = vld [vmem:[%s2320_s5 + $0xa] sm:$0x3] }
 0x15c   : > { %v669_v61 = vsel %vm667_vm7, %v662_v30, %v666_v39  ;;  %v671_v63 = vsel %vm667_vm7, %v666_v39, %v662_v30 }
 0x15d   : > { %854 = vmatprep.subr.bf16.mxu0 %v628_v40  ;;  %v685_v9 = vmul.f32 %v1919_v59, %v671_v63  ;;  %v686_v10 = vmul.f32 %v1922_v60, %v669_v61  ;;  %v1963_v40 = vrot.slane %v497_v35, %v1866_v20 }
 0x15e   : > { %855 = vmatpush1.bf16.msra.mxu0 %v627_v41  ;;  %v1966_v41 = vrot.slane %v497_v35, %v1868_v21 }
 0x15f   : > { %v634_v46 = vpop.permute.xlu1 %633  ;;  %v692_v47 = vpop.permute.xlu0 %691 }
 0x160   : > { %v638_v48 = vsel %vm637_vm6, %v630_v38, %v634_v46  ;;  %v640_v49 = vsel %vm637_vm6, %v634_v46, %v630_v38 }
 0x161   : > { %v653_v52 = vmul.f32 %v1897_v42, %v640_v49  ;;  %v654_v53 = vmul.f32 %v1900_v43, %v638_v48  ;;  %v719_v49 = vpack.c.bf16 %v1780_v5, %v1776_v62  ;;  %v1990_v62 = vrot.slane %v498_v6, %v1866_v20 }
 0x162   : > { %v1993_v5 = vrot.slane %v498_v6, %v1868_v21 }
 0x163   : > { %v660_v55 = vpop.permute.xlu1 %659  ;;  %v696_v56 = vpop.permute.xlu0 %695  ;;  %v658_v57 = vpack.c.bf16 %v656_v51, %v654_v53  ;;  %v657_v58 = vpack.c.bf16 %v655_v50, %v653_v52 }
 0x164   : > { %v699_v23 = vsel %vm697_vm8, %v692_v47, %v696_v56  ;;  %v701_v24 = vsel %vm697_vm8, %v696_v56, %v692_v47 }
 0x165   : > { %856 = vmatprep.subr.bf16.mxu0 %v658_v57  ;;  %v715_v31 = vmul.f32 %v1941_v18, %v701_v24  ;;  %v716_v32 = vmul.f32 %v1944_v22, %v699_v23 }
 0x166   : > { %857 = vmatpush1.bf16.msra.mxu0 %v657_v58 }
 0x167   : > { %v664_v1 = vpop.permute.xlu1 %663  ;;  %v724_v2 = vpop.permute.xlu0 %723 }
 0x168   : > { %v668_v3 = vsel %vm667_vm7, %v660_v55, %v664_v1  ;;  %v670_v4 = vsel %vm667_vm7, %v664_v1, %v660_v55 }
 0x169   : > { %v683_v11 = vmul.f32 %v1919_v59, %v670_v4  ;;  %v684_v12 = vmul.f32 %v1922_v60, %v668_v3 }
 0x16b   : > { %v690_v14 = vpop.permute.xlu1 %689  ;;  %v728_v15 = vpop.permute.xlu0 %727  ;;  %v688_v16 = vpack.c.bf16 %v686_v10, %v684_v12  ;;  %v687_v17 = vpack.c.bf16 %v685_v9, %v683_v11  ;;  %v499_v10 = vld [vmem:[%s2320_s5 + $0xe] sm:$0x3] }
 0x16c   : > { %v731_v44 = vsel %vm729_vm9, %v724_v2, %v728_v15  ;;  %v733_v45 = vsel %vm729_vm9, %v728_v15, %v724_v2  ;;  %v2015_v15 = vrot.slane %v499_v10, %v1868_v21 }
 0x16d   : > { %858 = vmatprep.subr.bf16.mxu0 %v688_v16  ;;  %v747_v50 = vmul.f32 %v1963_v40, %v731_v44  ;;  %v748_v51 = vmul.f32 %v1966_v41, %v733_v45 }
 0x16e   : > { %859 = vmatpush1.bf16.msra.mxu0 %v687_v17 }
 0x16f   : > { %v694_v27 = vpop.permute.xlu1 %693  ;;  %v754_v28 = vpop.permute.xlu0 %753 }
 0x170   : > { %v698_v29 = vsel %vm697_vm8, %v690_v14, %v694_v27  ;;  %v700_v30 = vsel %vm697_vm8, %v694_v27, %v690_v14  ;;  %v2012_v14 = vrot.slane %v499_v10, %v1866_v20 }
 0x171   : > { %v713_v33 = vmul.f32 %v1941_v18, %v700_v30  ;;  %v714_v34 = vmul.f32 %v1944_v22, %v698_v29 }
 0x173   : > { %v722_v36 = vpop.permute.xlu1 %721  ;;  %v758_v37 = vpop.permute.xlu0 %757  ;;  %v718_v38 = vpack.c.bf16 %v716_v32, %v714_v34  ;;  %v717_v39 = vpack.c.bf16 %v715_v31, %v713_v33  ;;  %v500_v33 = vld [vmem:[%s2320_s5 + $0x10] sm:$0x3] }
 0x174   : > { %v761_v56 = vsel %vm759_vm10, %v754_v28, %v758_v37  ;;  %v763_v57 = vsel %vm759_vm10, %v758_v37, %v754_v28 }
 0x175   : > { %860 = vmatprep.subr.bf16.mxu0 %v718_v38  ;;  %v777_v2 = vmul.f32 %v1990_v62, %v761_v56  ;;  %v778_v3 = vmul.f32 %v1993_v5, %v763_v57  ;;  %v2034_v38 = vrot.slane %v500_v33, %v1866_v20 }
 0x176   : > { %861 = vmatpush1.bf16.msra.mxu0 %v717_v39  ;;  %v2037_v39 = vrot.slane %v500_v33, %v1868_v21 }
 0x177   : > { %v726_v46 = vpop.permute.xlu1 %725  ;;  %862 = vmatprep.subr.bf16.mxu0 %v720_v8  ;;  %v784_v54 = vpop.permute.xlu0 %783 }
 0x178   : > { %v730_v47 = vsel %vm729_vm9, %v722_v36, %v726_v46  ;;  %v732_v48 = vsel %vm729_vm9, %v726_v46, %v722_v36 }
 0x179   : > { %v745_v52 = vmul.f32 %v1963_v40, %v730_v47  ;;  %v746_v53 = vmul.f32 %v1966_v41, %v732_v48 }
 0x17a   : > { %863 = vmatpush1.bf16.msra.mxu0 %v719_v49 }
 0x17b   : > { %v752_v7 = vpop.permute.xlu1 %751  ;;  %v750_v8 = vpack.c.bf16 %v748_v51, %v746_v53  ;;  %v749_v55 = vpack.c.bf16 %v747_v50, %v745_v52  ;;  %v788_v58 = vpop.permute.xlu0 %787  ;;  %v1530_v53 = vld [vmem:[%s2321_s6] ss:$8 sps:$4 sm:$0xff]  }
 0x17c   : > { %v791_v17 = vsel %vm789_vm11, %v784_v54, %v788_v58  ;;  %v793_v23 = vsel %vm789_vm11, %v788_v58, %v784_v54 }
 0x17d   : > { %864 = vmatprep.subr.bf16.mxu0 %v750_v8  ;;  %v807_v29 = vmul.f32 %v2012_v14, %v791_v17  ;;  %v808_v30 = vmul.f32 %v2015_v15, %v793_v23 }
 0x17e   : > { %865 = vmatpush1.bf16.msra.mxu0 %v749_v55 }
 0x17f   : > { %v756_v61 = vpop.permute.xlu1 %755  ;;  %v814_v16 = vpop.permute.xlu0 %813 }
 0x180   : > { %v760_v63 = vsel %vm759_vm10, %v752_v7, %v756_v61  ;;  %v762_v1 = vsel %vm759_vm10, %v756_v61, %v752_v7 }
 0x181   : > { %v775_v4 = vmul.f32 %v1990_v62, %v760_v63  ;;  %v776_v9 = vmul.f32 %v1993_v5, %v762_v1 }
 0x183   : > { %v782_v11 = vpop.permute.xlu1 %781  ;;  %v780_v12 = vpack.c.bf16 %v778_v3, %v776_v9  ;;  %v779_v13 = vpack.c.bf16 %v777_v2, %v775_v4  ;;  %v818_v34 = vpop.permute.xlu0 %817 }
 0x184   : > { %v821_v44 = vsel %vm819_vm12, %v814_v16, %v818_v34  ;;  %v823_v45 = vsel %vm819_vm12, %v818_v34, %v814_v16  ;;  %v916_v16 = vld [vmem:[%s491_s26 + $0x8] sm:$0xff] }
 0x185   : > { %866 = vmatprep.subr.bf16.mxu0 %v780_v12  ;;  %v837_v20 = vmul.f32 %v2034_v38, %v821_v44  ;;  %v838_v21 = vmul.f32 %v2037_v39, %v823_v45 }
 0x186   : > { %867 = vmatpush1.bf16.msra.mxu0 %v779_v13  ;;  %v915_v13 = vld [vmem:[%s491_s26] sm:$0xff] }
 0x187   : > { %v786_v24 = vpop.permute.xlu1 %785 }
 0x188   : > { %v790_v27 = vsel %vm789_vm11, %v782_v11, %v786_v24  ;;  %v792_v28 = vsel %vm789_vm11, %v786_v24, %v782_v11 }
 0x189   : > { %v805_v31 = vmul.f32 %v2012_v14, %v790_v27  ;;  %v806_v32 = vmul.f32 %v2015_v15, %v792_v28 }
 0x18b   : > { %v812_v35 = vpop.permute.xlu1 %811  ;;  %v810_v36 = vpack.c.bf16 %v808_v30, %v806_v32  ;;  %v809_v37 = vpack.c.bf16 %v807_v29, %v805_v31 }
 0x18d   : > { %868 = vmatprep.subr.bf16.mxu0 %v810_v36 }
 0x18e   : > { %869 = vmatpush1.bf16.msra.mxu0 %v809_v37 }
 0x18f   : > { %v816_v46 = vpop.permute.xlu1 %815 }
 0x190   : > { %v820_v47 = vsel %vm819_vm12, %v812_v35, %v816_v46  ;;  %v822_v48 = vsel %vm819_vm12, %v816_v46, %v812_v35 }
 0x191   : > { %v835_v49 = vmul.f32 %v2034_v38, %v820_v47  ;;  %v836_v50 = vmul.f32 %v2037_v39, %v822_v48 }
 0x193   : > { %v840_v51 = vpack.c.bf16 %v838_v21, %v836_v50  ;;  %v839_v52 = vpack.c.bf16 %v837_v20, %v835_v49 }
 0x194   : > { %v907_v55 = vpop.permute.xlu0 %906 }
 0x195   : > { %870 = vmatprep.subr.bf16.mxu0 %v840_v51 }
 0x196   : > { %871 = vmatpush1.bf16.msra.mxu0 %v839_v52 }
 0x198   : > { %v958_v23 = vpop.permute.xlu0 %957 }
 0x199   : > { %887 = vmatmul.mubr.bf16.vlgmr.msra.gmra.mrb[0].mxu0 %v1530_v53 }
 0x1a0   : > { %v902_v54 = vpop.permute.xlu1 %901 }
 0x1a4   : > { %v963_v17 = vpop.permute.xlu1 %962 }
 0x26c   : > { %v888_v6 = vpop.f32.mrb[0].mxu0 }
 0x26d   : > { %v909_v7 = vadd.f32 %v902_v54, %v888_v6  ;;  %v890_v8 = vpop.f32.mrb[1].mxu0 }
 0x26e   : > { %v910_v56 = vadd.f32 %v902_v54, %v890_v8  ;;  %v892_v57 = vpop.f32.mrb[2].mxu0 }
 0x26f   : > { %v911_v58 = vadd.f32 %v907_v55, %v892_v57  ;;  %v894_v61 = vpop.f32.mrb[3].mxu0  ;;  %v923_v9 = vmul.f32 %v909_v7, %v909_v7 }
 0x270   : > { %v912_v63 = vadd.f32 %v907_v55, %v894_v61  ;;  %v917_v1 = vadd.f32 %v910_v56, %v909_v7  ;;  %v924_v10 = vmul.f32 %v910_v56, %v910_v56 }
 0x271   : > { %v925_v2 = vmul.f32 %v911_v58, %v911_v58 }
 0x272   : > { %918 = vadd.xlane.f32.xlu1 %v917_v1  ;;  %v920_v3 = vadd.f32 %v912_v63, %v911_v58  ;;  %v926_v4 = vmul.f32 %v912_v63, %v912_v63  ;;  %v927_v12 = vadd.f32 %v924_v10, %v923_v9 }
 0x274   : > { %921 = vadd.xlane.f32.xlu0 %v920_v3  ;;  %v930_v11 = vadd.f32 %v926_v4, %v925_v2 }
 0x276   : > { %931 = vadd.xlane.f32.xlu1 %v930_v11 }
 0x278   : > { %928 = vadd.xlane.f32.xlu0 %v927_v12 }
 0x287   : > { %971 = vperm.xlu1 %1529, %v915_v13  }
 0x28e   : > { %976 = vperm.xlu0 %1528, %v916_v16  }
 0x2ff   : > { %v919_v24 = vpop.xlane.xlu1 %918 }
 0x300   : > { %v933_v28 = vmul.f32 0.00390625, %v919_v24 }
 0x301   : > { %v922_v27 = vpop.xlane.xlu0 %921 }
 0x302   : > { %v934_v29 = vmul.f32 0.00390625, %v922_v27  ;;  %v937_v35 = vmul.f32 %v933_v28, %v933_v28  ;;  %v943_v49 = vsub.f32 %v909_v7, %v933_v28  ;;  %v944_v50 = vsub.f32 %v910_v56, %v933_v28 }
 0x303   : > { %v932_v30 = vpop.xlane.xlu1 %931 }
 0x304   : > { %v936_v31 = vmul.f32 0.00390625, %v932_v30  ;;  %v938_v32 = vmul.f32 %v934_v29, %v934_v29  ;;  %v945_v48 = vsub.f32 %v911_v58, %v934_v29  ;;  %v946_v20 = vsub.f32 %v912_v63, %v934_v29 }
 0x305   : > { %v929_v33 = vpop.xlane.xlu0 %928 }
 0x306   : > { %v940_v34 = vsub.f32 %v936_v31, %v938_v32  ;;  %v935_v36 = vmul.f32 0.00390625, %v929_v33 }
 0x307   : > { %v972_v4 = vpop.permute.xlu1 %971 }
 0x308   : > { %v942_v37 = vmax.f32 %v940_v34, 0.0  ;;  %v939_v44 = vsub.f32 %v935_v36, %v937_v35  ;;  %v1535_v34 = vld [vmem:[%s2323_s8 + $0x4] ss:$8 sps:$4 sm:$0xff]  }
 0x309   : > { %1453 = vmatprep.mubr.msk.bf16.mxu1 %vm850_vm4, %v1535_v34  ;;  %v1207_v35 = vld [vmem:[%s2324_s9 + $0x8] sm:$0xff]  ;;  %v1206_v36 = vld [vmem:[%s2324_s9] sm:$0xff] }
 0x30a   : > { %v948_v45 = vadd.f32 1e-05, %v942_v37  ;;  %v941_v46 = vmax.f32 %v939_v44, 0.0  ;;  %v1278_v37 = vld [vmem:[%s2326_s11 + $0x8] sm:$0xff]  ;;  %v1277_v44 = vld [vmem:[%s2326_s11] sm:$0xff] }
 0x30c   : > { %1549 = vrsqrt.f32 %v948_v45  ;;  %v947_v47 = vadd.f32 1e-05, %v941_v46 }
 0x30d   : > { %v977_v57 = vpop.permute.xlu0 %976 }
 0x30e   : > { %1551 = vrsqrt.f32 %v947_v47 }
 0x316   : > { %v1550_v21 = vpop.eup %1549 }
 0x317   : > { %v953_v51 = vmul.f32 %v1550_v21, %v945_v48  ;;  %v954_v52 = vmul.f32 %v1550_v21, %v946_v20 }
 0x318   : > { %v1552_v53 = vpop.eup %1551 }
 0x319   : > { %v951_v54 = vmul.f32 %v1552_v53, %v943_v49  ;;  %v952_v6 = vmul.f32 %v1552_v53, %v944_v50  ;;  %v967_v8 = vmul.f32 %v963_v17, %v953_v51  ;;  %v968_v55 = vmul.f32 %v963_v17, %v954_v52 }
 0x31b   : > { %v965_v61 = vmul.f32 %v958_v23, %v951_v54  ;;  %v966_v1 = vmul.f32 %v958_v23, %v952_v6  ;;  %v981_v2 = vadd.f32 %v977_v57, %v967_v8  ;;  %v982_v3 = vadd.f32 %v977_v57, %v968_v55 }
 0x31d   : > { %v979_v9 = vadd.f32 %v972_v4, %v965_v61  ;;  %v980_v10 = vadd.f32 %v972_v4, %v966_v1  ;;  %v991_v58 = vmul.f32 1.442695, %v981_v2  ;;  %v993_v7 = vmul.f32 1.442695, %v982_v3 }
 0x31e   : > { %vm985_vm13 = vcmp.gt.f32.partialorder %v981_v2, 0.0  ;;  %vm986_vm0 = vcmp.gt.f32.partialorder %v982_v3, 0.0 }
 0x31f   : > { %v987_v63 = vmul.f32 1.442695, %v979_v9  ;;  %v989_v11 = vmul.f32 1.442695, %v980_v10  ;;  %1553 = vpow2.f32 %v991_v58  ;;  %vm983_vm14 = vcmp.gt.f32.partialorder %v979_v9, 0.0 }
 0x320   : > { %vm984_vm15 = vcmp.gt.f32.partialorder %v980_v10, 0.0 }
 0x321   : > { %1555 = vpow2.f32 %v987_v63 }
 0x322   : > { %1557 = vpow2.f32 %v989_v11 }
 0x323   : > { %1559 = vpow2.f32 %v993_v7 }
 0x329   : > { %v1554_v56 = vpop.eup %1553 }
 0x32a   : > { %v1449_v13 = vadd.f32 -1.0, %v1554_v56 }
 0x32b   : > { %v1556_v12 = vpop.eup %1555 }
 0x32c   : > { %v1558_v16 = vpop.eup %1557  ;;  %v1447_v17 = vadd.f32 -1.0, %v1556_v12  ;;  %v2058_v27 = vsel %vm985_vm13, %v981_v2, %v1449_v13 }
 0x32d   : > { %v1560_v23 = vpop.eup %1559  ;;  %v1448_v24 = vadd.f32 -1.0, %v1558_v16  ;;  %1007 = vrot.lane.b32.xlu0 %v2058_v27, %s2348_s20 }
 0x32e   : > { %v2060_v28 = vsel %vm983_vm14, %v979_v9, %v1447_v17  ;;  %v1450_v29 = vadd.f32 -1.0, %v1560_v23 }
 0x32f   : > { %v2064_v30 = vsel %vm984_vm15, %v980_v10, %v1448_v24  ;;  %1005 = vrot.lane.b32.xlu1 %v2060_v28, %s2348_s20  ;;  %v1077_v31 = vpack.c.bf16 %v2058_v27, %v2060_v28 }
 0x330   : > { %v2070_v32 = vsel %vm986_vm0, %v982_v3, %v1450_v29 }
 0x331   : > { %v1078_v33 = vpack.c.bf16 %v2070_v32, %v2064_v30  ;;  %1011 = vrot.lane.b32.xlu0 %v2070_v32, %s2348_s20 }
 0x333   : > { %1009 = vrot.lane.b32.xlu1 %v2064_v30, %s2348_s20  ;;  %s2271_s20 = scalar_lea.hbm %s2327_s12, %s1466_s15 }
 0x335   : > { %1025 = vrot.lane.b32.xlu0 %v2058_v27, %s2349_s1 }
 0x337   : > { %1023 = vrot.lane.b32.xlu1 %v2060_v28, %s2349_s1 }
 0x339   : > { %1029 = vrot.lane.b32.xlu0 %v2070_v32, %s2349_s1 }
 0x33b   : > { %1027 = vrot.lane.b32.xlu1 %v2064_v30, %s2349_s1 }
 0x33d   : > { %1043 = vrot.lane.b32.xlu0 %v2058_v27, %s2350_s28 }
 0x33f   : > { %1041 = vrot.lane.b32.xlu1 %v2060_v28, %s2350_s28 }
 0x341   : > { %1047 = vrot.lane.b32.xlu0 %v2070_v32, %s2350_s28 }
 0x343   : > { %1045 = vrot.lane.b32.xlu1 %v2064_v30, %s2350_s28  ;;  %s1638_s28 = smov [#allocation2]  }
 0x345   : > { %1061 = vrot.lane.b32.xlu0 %v2058_v27, %s2351_s0 }
 0x347   : > { %1059 = vrot.lane.b32.xlu1 %v2060_v28, %s2351_s0 }
 0x349   : > { %1065 = vrot.lane.b32.xlu0 %v2070_v32, %s2351_s0 }
 0x34b   : > { %1063 = vrot.lane.b32.xlu1 %v2064_v30, %s2351_s0  ;;  %s464_s0 = sand.u32 1, %s1619_s22  }
 0x34c   : > { %s2273_s25 = scalar_lea.sflag [#allocation3], %s464_s0 }
 0x34d   : > { %1081 = vrot.lane.b32.xlu0 %v2058_v27, %s2352_s16 }
 0x34f   : > { %1079 = vrot.lane.b32.xlu1 %v2060_v28, %s2352_s16 }
 0x351   : > { %1085 = vrot.lane.b32.xlu0 %v2070_v32, %s2352_s16 }
 0x353   : > { %1083 = vrot.lane.b32.xlu1 %v2064_v30, %s2352_s16  ;;  %s1429_s16 = sshll.u32 %s464_s0, 5 }
 0x355   : > { %1099 = vrot.lane.b32.xlu0 %v2058_v27, %s2353_s17 }
 0x357   : > { %1097 = vrot.lane.b32.xlu1 %v2060_v28, %s2353_s17 }
 0x359   : > { %1103 = vrot.lane.b32.xlu0 %v2070_v32, %s2353_s17 }
 0x35b   : > { %1101 = vrot.lane.b32.xlu1 %v2064_v30, %s2353_s17 }
 0x35d   : > { %1117 = vrot.lane.b32.xlu0 %v2058_v27, %s1636_s18 }
 0x35f   : > { %1115 = vrot.lane.b32.xlu1 %v2060_v28, %s1636_s18 }
 0x361   : > { %1121 = vrot.lane.b32.xlu0 %v2070_v32, %s1636_s18 }
 0x363   : > { %1119 = vrot.lane.b32.xlu1 %v2064_v30, %s1636_s18 }
 0x365   : > { %1135 = vrot.lane.b32.xlu0 %v2058_v27, %s1637_s29 }
 0x367   : > { %1133 = vrot.lane.b32.xlu1 %v2060_v28, %s1637_s29 }
 0x369   : > { %1139 = vrot.lane.b32.xlu0 %v2070_v32, %s1637_s29 }
 0x36b   : > { %1137 = vrot.lane.b32.xlu1 %v2064_v30, %s1637_s29 }
 0x36d   : > { %1215 = vperm.xlu0 %1528, %v1207_v35  }
 0x36f   : > { %1210 = vperm.xlu1 %1529, %v1206_v36  }
 0x371   : > { %1286 = vperm.xlu0 %1528, %v1278_v37  }
 0x373   : > { %1281 = vperm.xlu1 %1529, %v1277_v44  }
 0x39f   : > { %v1008_v45 = vpop.permute.xlu0 %1007 }
 0x3a1   : > { %v1006_v46 = vpop.permute.xlu1 %1005 }
 0x3a3   : > { %v1012_v47 = vpop.permute.xlu0 %1011 }
 0x3a4   : > { %v1014_v48 = vsel %vm607_vm5, %v1008_v45, %v1012_v47  ;;  %v1016_v20 = vsel %vm607_vm5, %v1012_v47, %v1008_v45 }
 0x3a5   : > { %v1010_v21 = vpop.permute.xlu1 %1009  ;;  %v1019_v51 = vmul.f32 %v1016_v20, %v1875_v25  ;;  %v1020_v54 = vmul.f32 %v1014_v48, %v1878_v26 }
 0x3a6   : > { %v1013_v49 = vsel %vm607_vm5, %v1006_v46, %v1010_v21  ;;  %v1015_v50 = vsel %vm607_vm5, %v1010_v21, %v1006_v46 }
 0x3a7   : > { %v1017_v52 = vmul.f32 %v1015_v50, %v1875_v25  ;;  %v1018_v53 = vmul.f32 %v1013_v49, %v1878_v26  ;;  %v1026_v6 = vpop.permute.xlu0 %1025 }
 0x3a9   : > { %v1024_v8 = vpop.permute.xlu1 %1023  ;;  %v1022_v55 = vpack.c.bf16 %v1020_v54, %v1018_v53  ;;  %v1021_v57 = vpack.c.bf16 %v1019_v51, %v1017_v52 }
 0x3ab   : > { %1163 = vmatprep.subr.bf16.mxu1 %v1022_v55  ;;  %v1030_v61 = vpop.permute.xlu0 %1029 }
 0x3ac   : > { %1164 = vmatpush1.bf16.msra.mxu1 %v1021_v57  ;;  %v1032_v1 = vsel %vm637_vm6, %v1026_v6, %v1030_v61  ;;  %v1034_v2 = vsel %vm637_vm6, %v1030_v61, %v1026_v6 }
 0x3ad   : > { %v1028_v3 = vpop.permute.xlu1 %1027  ;;  %v1037_v4 = vmul.f32 %v1034_v2, %v1897_v42  ;;  %v1038_v9 = vmul.f32 %v1032_v1, %v1900_v43 }
 0x3ae   : > { %v1031_v25 = vsel %vm637_vm6, %v1024_v8, %v1028_v3  ;;  %v1033_v26 = vsel %vm637_vm6, %v1028_v3, %v1024_v8 }
 0x3af   : > { %v1035_v10 = vmul.f32 %v1033_v26, %v1897_v42  ;;  %v1036_v58 = vmul.f32 %v1031_v25, %v1900_v43  ;;  %v1044_v63 = vpop.permute.xlu0 %1043 }
 0x3b1   : > { %v1042_v11 = vpop.permute.xlu1 %1041  ;;  %v1040_v7 = vpack.c.bf16 %v1038_v9, %v1036_v58  ;;  %v1039_v56 = vpack.c.bf16 %v1037_v4, %v1035_v10 }
 0x3b3   : > { %1165 = vmatprep.subr.bf16.mxu1 %v1040_v7  ;;  %v1048_v12 = vpop.permute.xlu0 %1047 }
 0x3b4   : > { %1166 = vmatpush1.bf16.msra.mxu1 %v1039_v56  ;;  %v1050_v13 = vsel %vm667_vm7, %v1044_v63, %v1048_v12  ;;  %v1052_v16 = vsel %vm667_vm7, %v1048_v12, %v1044_v63 }
 0x3b5   : > { %v1046_v17 = vpop.permute.xlu1 %1045  ;;  %v1055_v43 = vmul.f32 %v1052_v16, %v1919_v59  ;;  %v1056_v24 = vmul.f32 %v1050_v13, %v1922_v60 }
 0x3b6   : > { %v1049_v23 = vsel %vm667_vm7, %v1042_v11, %v1046_v17  ;;  %v1051_v42 = vsel %vm667_vm7, %v1046_v17, %v1042_v11 }
 0x3b7   : > { %v1053_v29 = vmul.f32 %v1051_v42, %v1919_v59  ;;  %v1054_v34 = vmul.f32 %v1049_v23, %v1922_v60  ;;  %v1062_v35 = vpop.permute.xlu0 %1061 }
 0x3b9   : > { %v1060_v36 = vpop.permute.xlu1 %1059  ;;  %v1058_v37 = vpack.c.bf16 %v1056_v24, %v1054_v34  ;;  %v1057_v44 = vpack.c.bf16 %v1055_v43, %v1053_v29 }
 0x3bb   : > { %1167 = vmatprep.subr.bf16.mxu1 %v1058_v37  ;;  %v1066_v45 = vpop.permute.xlu0 %1065 }
 0x3bc   : > { %1168 = vmatpush1.bf16.msra.mxu1 %v1057_v44  ;;  %v1068_v46 = vsel %vm697_vm8, %v1062_v35, %v1066_v45  ;;  %v1070_v47 = vsel %vm697_vm8, %v1066_v45, %v1062_v35 }
 0x3bd   : > { %v1064_v48 = vpop.permute.xlu1 %1063  ;;  %v1073_v60 = vmul.f32 %v1070_v47, %v1941_v18  ;;  %v1074_v21 = vmul.f32 %v1068_v46, %v1944_v22 }
 0x3be   : > { %v1067_v20 = vsel %vm697_vm8, %v1060_v36, %v1064_v48  ;;  %v1069_v59 = vsel %vm697_vm8, %v1064_v48, %v1060_v36 }
 0x3bf   : > { %v1071_v49 = vmul.f32 %v1069_v59, %v1941_v18  ;;  %v1072_v50 = vmul.f32 %v1067_v20, %v1944_v22  ;;  %v1082_v51 = vpop.permute.xlu0 %1081 }
 0x3c1   : > { %v1080_v52 = vpop.permute.xlu1 %1079  ;;  %v1076_v53 = vpack.c.bf16 %v1074_v21, %v1072_v50  ;;  %v1075_v54 = vpack.c.bf16 %v1073_v60, %v1071_v49  ;;  %v1561_v49 = vld [vmem:[%s1760_s19 + $0x8] sm:$0xff]  ;;  %v1562_v50 = vld [vmem:[%s1760_s19 + $0x18] sm:$0xff] }
 0x3c3   : > { %1169 = vmatprep.subr.bf16.mxu1 %v1076_v53  ;;  %v1086_v6 = vpop.permute.xlu0 %1085  ;;  %v1564_v53 = vld [vmem:[%s1760_s19 + $0x10] sm:$0xff] }
 0x3c4   : > { %1170 = vmatpush1.bf16.msra.mxu1 %v1075_v54  ;;  %v1088_v8 = vsel %vm729_vm9, %v1082_v51, %v1086_v6  ;;  %v1090_v55 = vsel %vm729_vm9, %v1086_v6, %v1082_v51  ;;  %v1225_v51 = vpack.c.bf16 %v1562_v50, %v1561_v49 }
 0x3c5   : > { %v1084_v57 = vpop.permute.xlu1 %1083  ;;  %1171 = vmatprep.subr.bf16.mxu1 %v1078_v33  ;;  %v1093_v61 = vmul.f32 %v1088_v8, %v1963_v40  ;;  %v1094_v1 = vmul.f32 %v1090_v55, %v1966_v41 }
 0x3c6   : > { %v1087_v18 = vsel %vm729_vm9, %v1080_v52, %v1084_v57  ;;  %v1089_v22 = vsel %vm729_vm9, %v1084_v57, %v1080_v52  ;;  %v1563_v52 = vld [vmem:[%s1760_s19] sm:$0xff]  ;;  %s466_s19 = scalar_lea.vmem [#allocation2], %s1429_s16  ;;  %s1569_s16 = sshll.u32 %s1638_s28, 4  ;;  %s1570_s16 = int_to_ptr.vmem [resolvable:$false] %s1569_s16 }
 0x3c7   : > { %v1091_v2 = vmul.f32 %v1087_v18, %v1963_v40  ;;  %v1092_v3 = vmul.f32 %v1089_v22, %v1966_v41  ;;  %v1100_v25 = vpop.permute.xlu0 %1099  ;;  %v1224_v54 = vpack.c.bf16 %v1564_v53, %v1563_v52  ;;  %s1315_s17 = sshll.u32 %s466_s19, 4  ;;  %s1571_s2 = scalar_lea.vmem %s1570_s16, 1024  ;;  %s2266_s17 = int_to_ptr.vmem [resolvable:$true] %s1315_s17 }
 0x3c8   : > { %1172 = vmatpush1.bf16.msra.mxu1 %v1077_v31  ;;  %s1565_s18 = scalar_lea.vmem %s2266_s17, 512  ;;  %p1572_p0 = scmp.lt.s32.totalorder %s2266_s17, %s1570_s16 }
 0x3c9   : > { %v1098_v30 = vpop.permute.xlu1 %1097  ;;  %v1096_v32 = vpack.c.bf16 %v1094_v1, %v1092_v3  ;;  %v1095_v33 = vpack.c.bf16 %v1093_v61, %v1091_v2  ;;  %p1566_p11 = scmp.ne.s32.totalorder %s2266_s17, %s1565_s18  ;;  %p1573_p1 = scmp.lt.s32.totalorder %s1571_s2, %s1565_s18 }
 0x3cb   : > { %1173 = vmatprep.subr.bf16.mxu1 %v1096_v32  ;;  %v1104_v26 = vpop.permute.xlu0 %1103  ;;  %p1567_p12 = pnand %p1566_p11, %p1743_p5  ;;  %p1574_p2 = por %p1573_p1, %p1572_p0 }
 0x3cc   : > { %1174 = vmatpush1.bf16.msra.mxu1 %v1095_v33  ;;  %v1106_v4 = vsel %vm759_vm10, %v1100_v25, %v1104_v26  ;;  %v1108_v9 = vsel %vm759_vm10, %v1104_v26, %v1100_v25 }
 0x3cd   : > { %v1102_v40 = vpop.permute.xlu1 %1101  ;;  %v1111_v28 = vmul.f32 %v1106_v4, %v1990_v62  ;;  %v1112_v31 = vmul.f32 %v1108_v9, %v1993_v5  ;;  %p1568_p13 = pneg %p1567_p12 }
 0x3ce   : > { %v1105_v41 = vsel %vm759_vm10, %v1098_v30, %v1102_v40  ;;  %v1107_v27 = vsel %vm759_vm10, %v1102_v40, %v1098_v30 }
 0x3cf   : > { %v1109_v10 = vmul.f32 %v1105_v41, %v1990_v62  ;;  %v1110_v58 = vmul.f32 %v1107_v27, %v1993_v5  ;;  %v1118_v63 = vpop.permute.xlu0 %1117  ;;  %p1575_p3 = pnand %p1574_p2, %p1568_p13 }
 0x3d1   : > { %v1116_v11 = vpop.permute.xlu1 %1115  ;;  %v1114_v7 = vpack.c.bf16 %v1112_v31, %v1110_v58  ;;  %v1113_v56 = vpack.c.bf16 %v1111_v28, %v1109_v10 }
 0x3d3   : > { %1175 = vmatprep.subr.bf16.mxu1 %v1114_v7  ;;  %v1122_v12 = vpop.permute.xlu0 %1121 }
 0x3d4   : > { %1176 = vmatpush1.bf16.msra.mxu1 %v1113_v56  ;;  %v1124_v13 = vsel %vm789_vm11, %v1118_v63, %v1122_v12  ;;  %v1126_v16 = vsel %vm789_vm11, %v1122_v12, %v1118_v63 }
 0x3d5   : > { %v1120_v17 = vpop.permute.xlu1 %1119  ;;  %v1129_v5 = vmul.f32 %v1124_v13, %v2012_v14  ;;  %v1130_v42 = vmul.f32 %v1126_v16, %v2015_v15 }
 0x3d6   : > { %v1123_v23 = vsel %vm789_vm11, %v1116_v11, %v1120_v17  ;;  %v1125_v62 = vsel %vm789_vm11, %v1120_v17, %v1116_v11 }
 0x3d7   : > { %v1127_v43 = vmul.f32 %v1123_v23, %v2012_v14  ;;  %v1128_v24 = vmul.f32 %v1125_v62, %v2015_v15  ;;  %v1136_v29 = vpop.permute.xlu0 %1135 }
 0x3d9   : > { %v1134_v34 = vpop.permute.xlu1 %1133  ;;  %v1132_v35 = vpack.c.bf16 %v1130_v42, %v1128_v24  ;;  %v1131_v36 = vpack.c.bf16 %v1129_v5, %v1127_v43 }
 0x3db   : > { %1177 = vmatprep.subr.bf16.mxu1 %v1132_v35  ;;  %v1140_v37 = vpop.permute.xlu0 %1139 }
 0x3dc   : > { %1178 = vmatpush1.bf16.msra.mxu1 %v1131_v36  ;;  %v1142_v44 = vsel %vm819_vm12, %v1136_v29, %v1140_v37  ;;  %v1144_v45 = vsel %vm819_vm12, %v1140_v37, %v1136_v29 }
 0x3dd   : > { %v1138_v46 = vpop.permute.xlu1 %1137  ;;  %v1147_v47 = vmul.f32 %v1142_v44, %v2034_v38  ;;  %v1148_v48 = vmul.f32 %v1144_v45, %v2037_v39 }
 0x3de   : > { %v1141_v14 = vsel %vm819_vm12, %v1134_v34, %v1138_v46  ;;  %v1143_v15 = vsel %vm819_vm12, %v1138_v46, %v1134_v34 }
 0x3df   : > { %v1145_v20 = vmul.f32 %v1141_v14, %v2034_v38  ;;  %v1146_v59 = vmul.f32 %v1143_v15, %v2037_v39  ;;  %v1536_v38 = vld [vmem:[%s2325_s10] sm:$0xff]  }
 0x3e1   : > { %v1150_v60 = vpack.c.bf16 %v1148_v48, %v1146_v59  ;;  %v1149_v21 = vpack.c.bf16 %v1147_v47, %v1145_v20 }
 0x3e3   : > { %1179 = vmatprep.subr.bf16.mxu1 %v1150_v60 }
 0x3e4   : > { %1180 = vmatpush1.bf16.msra.mxu1 %v1149_v21 }
 0x3e5   : > { %1234 = vmatprep.subr.bf16.mxu1 %v1225_v51 }
 0x3e7   : > { %1196 = vmatmul.mubr.bf16.vlgmr.msra.gmra.mrb[0].mxu1 %v1533_v19 }
 0x3e8   : > { %1235 = vmatpush1.bf16.msra.mxu1 %v1224_v54  ;;  %1266 = vmatprep.mubr.bf16.mxu1 %v1629_v0 }
 0x3ec   : > { %v1216_v6 = vpop.permute.xlu0 %1215 }
 0x3ee   : > { %v1211_v39 = vpop.permute.xlu1 %1210 }
 0x3f0   : > { %v1287_v3 = vpop.permute.xlu0 %1286 }
 0x3f2   : > { %v1282_v18 = vpop.permute.xlu1 %1281 }
 0x3f3   : > { %1455 = vmatmul.mubr.msk.bf16.vlgmr.msra.gmra.mrb[0].mxu1 %vm850_vm4, %v1536_v38 }
 0x4c6   : > { %v1268_v8 = vpop.f32.mrb[0].mxu1 }
 0x4c7   : > { %v1467_v55 = vadd.f32 %v1268_v8, %v1211_v39  ;;  %v1270_v57 = vpop.f32.mrb[1].mxu1 }
 0x4c8   : > { %v1469_v22 = vadd.f32 %v1270_v57, %v1211_v39  ;;  %v1272_v61 = vpop.f32.mrb[2].mxu1 }
 0x4c9   : > { %v1468_v0 = vadd.f32 %v1467_v55, %v1282_v18  ;;  %v1471_v1 = vadd.f32 %v1272_v61, %v1216_v6  ;;  %v1274_v2 = vpop.f32.mrb[3].mxu1 }
 0x4ca   : > { %v1470_v25 = vadd.f32 %v1469_v22, %v1282_v18  ;;  %v1473_v30 = vadd.f32 %v1274_v2, %v1216_v6 }
 0x4cb   : > { %1297 = vst [vmem:[%s466_s19] sm:$0xff] %v1468_v0  ;;  %v1472_v32 = vadd.f32 %v1471_v1, %v1287_v3 }
 0x4cc   : > { %1298 = vst [vmem:[%s466_s19 + $0x8] sm:$0xff] %v1470_v25  ;;  %v1474_v33 = vadd.f32 %v1473_v30, %v1287_v3 }
 0x4cd   : > { %1299 = vst [vmem:[%s466_s19 + $0x10] sm:$0xff] %v1472_v32 }
 0x4ce   : > { %1300 = vst [vmem:[%s466_s19 + $0x18] sm:$0xff] %v1474_v33 }
 0x4cf   : > { %1578 = shalt.err (!%p1575_p3)
}
 0x4d0   : > { %s1579_s0 = scalar_lea.hbm %s2271_s20, 512  ;;  %s1583_s26 = scalar_lea.hbm %s2327_s12, 1024 }
 0x4d1   : > { %p1580_p4 = scmp.ne.s32.totalorder %s2271_s20, %s1579_s0  ;;  %p1584_p9 = scmp.lt.u32.totalorder %s2271_s20, %s2327_s12 }
 0x4d2   : > { %p1585_p10 = scmp.lt.u32.totalorder %s1583_s26, %s1579_s0  ;;  %p1587_p12 = scmp.lt.u32.totalorder %s1579_s0, %s2271_s20 }
 0x4d3   : > { %p1581_p7 = pnand %p1580_p4, %p1743_p5 }
 0x4d4   : > { %p1586_p11 = por %p1585_p10, %p1584_p9 }
 0x4d5   : > { %p1582_p8 = pneg %p1581_p7 }
 0x4d6   : > { %p1588_p13 = por %p1587_p12, %p1586_p11 }
 0x4d8   : > { %p1589_p0 = pnand %p1588_p13, %p1582_p8 }
 0x4da   : > { %1592 = shalt.err (!%p1589_p0)
}
 0x4db   : > { %s1639_s2 = smov 256  }
 0x4dc   : > { %1479 = dma.vmem_to_hbm [thread:$0]  (%p1743_p5), %s2266_s17, 512, %s2271_s20, %s2273_s25, %s1639_s2, %s1639_s2, %s2349_s1  }
 0x4dd PF: > { %p1485_p1 = scmp.ge.s32.totalorder %s1627_s24, 2  ;;  %s1330_s18 = sand.u32 1, %s1615_s21  }
 0x4de   : > { %s1331_s16 = scalar_lea.sflag [#allocation3], %s1330_s18 }
 0x4df   : > { %p1482_p2 = pnand %p1485_p1, %p1747_p6 }
 0x4e1   : > { %1610 = dma.done.wait (!%p1482_p2), %s1331_s16, 512  }
 0x4e2   : > { %1612 = vsyncadd (!%p1482_p2), %s1331_s16, 4294966784  ;;  %p22_p3 = scmp.ge.s32.totalorder %s1730_s27, 4   ;;  %s2354_s21 = smov %s1619_s22 }
 0x4e3   : > { %s2355_s22 = smov %s1623_s23  ;;  %s2356_s23 = smov %s1741_s30 }
 0x4e4   : > { %s2357_s24 = smov %s1730_s27  ;;  %24 = sbr.rel (!%p22_p3) target bundleno = 7 (0x7), region = 115 }
 0x4eb   :  { %1336 = vsyncpa [#allocation3], 1 }
 0x4ec   :  { %1338 = vsyncpa [#allocation3 + $0x1], 1 }

</bundles_post_ra>
